<compile_context>
chip_gen: v6e
topology: v6e:2x2x1
jax: 0.10.0
libtpu: 0.0.40
codegen_flags: <defaults>
</compile_context>

<pallas_src>
import functools

import jax
import jax.numpy as jnp
from jax import lax
from jax.experimental import pallas as pl
from jax.experimental.pallas import tpu as pltpu

# ----------------------------- tiling constants -----------------------------
LANES = 128                     # TPU lane width
CHUNK_ROWS = 64                 # rows per in-kernel chunk (vreg-resident set)
MAX_BLOCK_ROWS = 2048           # cap on rows per grid step (~6 MiB VMEM w/ 2 bufs)
MIN_PALLAS_N = CHUNK_ROWS * LANES   # below this, fused XLA is faster than a launch
N_HIDDEN = 16

# flat SMEM parameter layout: [w1(2,16) row-major | b1(16) | w2(16) | b2(1)]
_W1_OFF = 0
_B1_OFF = 32
_W2_OFF = 48
_B2_OFF = 64
_N_PARAMS = 65


def _round_up(a, b):
    return ((a + b - 1) // b) * b


def length_model_kernel(params_ref, x_ref, o_ref, *, num_chunks):
    # params_ref: SMEM f32[65]
    # x_ref:      VMEM f32[2, BLOCK_ROWS, 128]   (x0 / x1 lane-dense planes)
    # o_ref:      VMEM f32[BLOCK_ROWS, 128]
    def chunk_body(c, carry):
        start = pl.multiple_of(c * CHUNK_ROWS, CHUNK_ROWS)
        rows = pl.ds(start, CHUNK_ROWS)
        x0 = x_ref[0, rows, :]                    # [CHUNK_ROWS, 128]
        x1 = x_ref[1, rows, :]

        acc = jnp.zeros((CHUNK_ROWS, LANES), jnp.float32)
        for j in range(N_HIDDEN):                 # fully unrolled VPU FMA chain
            w0j = params_ref[_W1_OFF + j]                  # w1[0, j]
            w1j = params_ref[_W1_OFF + N_HIDDEN + j]       # w1[1, j]
            b1j = params_ref[_B1_OFF + j]
            w2j = params_ref[_W2_OFF + j]
            hj = jnp.maximum(x0 * w0j + x1 * w1j + b1j, 0.0)
            acc = acc + hj * w2j
        y = acc + params_ref[_B2_OFF]

        # numerically stable softplus: max(y,0) + log1p(exp(-|y|))  (EUP ops)
        o_ref[rows, :] = jnp.maximum(y, 0.0) + jnp.log1p(jnp.exp(-jnp.abs(y)))
        return carry

    lax.fori_loop(0, num_chunks, chunk_body, 0)


def length_model_forward(x, w1, b1, w2, b2, *, use_pallas=None):
    """x: [N, 2] -> float32 [N] (scalar for N == 1, matching torch .squeeze())."""
    n = x.shape[0]
    xf = x.astype(jnp.float32)

    if use_pallas is None:
        use_pallas = n >= MIN_PALLAS_N
    if not use_pallas:
        # Small-N fast path: one fused XLA expression beats a Pallas launch.
        h = jnp.maximum(xf @ w1.reshape(2, N_HIDDEN) + b1.reshape(1, N_HIDDEN), 0.0)
        y = h @ w2.reshape(N_HIDDEN, 1) + b2.reshape(1, 1)
        return jnp.squeeze(jax.nn.softplus(y))

    rows_needed = (n + LANES - 1) // LANES
    # Block size: as big as useful, but >= 2 grid steps when possible so the
    # "parallel" grid axis shards across both v7x TensorCores.
    block_rows = max(CHUNK_ROWS,
                     min(MAX_BLOCK_ROWS,
                         _round_up((rows_needed + 1) // 2, CHUNK_ROWS)))
    rows_total = _round_up(rows_needed, block_rows)
    num_tiles = rows_total // block_rows
    n_pad = rows_total * LANES

    if n_pad != n:
        xf = jnp.pad(xf, ((0, n_pad - n), (0, 0)))
    # One fused pad+transpose pass -> lane-dense [2, rows_total, 128] planes.
    x_planes = xf.T.reshape(2, rows_total, LANES)

    params = jnp.concatenate(
        [w1.reshape(-1), b1.reshape(-1), w2.reshape(-1), b2.reshape(-1)]
    ).astype(jnp.float32)
    assert params.shape == (_N_PARAMS,)

    kernel = functools.partial(length_model_kernel,
                               num_chunks=block_rows // CHUNK_ROWS)

    out2d = pl.pallas_call(
        kernel,
        grid=(num_tiles,),
        in_specs=[
            pl.BlockSpec(memory_space=pltpu.MemorySpace.SMEM),          # params
            pl.BlockSpec((2, block_rows, LANES), lambda i: (0, i, 0)),  # x planes
        ],
        out_specs=pl.BlockSpec((block_rows, LANES), lambda i: (i, 0)),
        out_shape=jax.ShapeDtypeStruct((rows_total, LANES), jnp.float32),
        compiler_params=pltpu.CompilerParams(
            dimension_semantics=("parallel",),   # shard grid across TCs on v7x
        ),
    )(params, x_planes)

    out = out2d.reshape(-1)
    if n_pad != n:
        out = out[:n]
    # torch .squeeze() removes ALL size-1 dims -> scalar when N == 1.
    return jnp.squeeze(out)


def init_params(key):
    """Deterministic init mimicking torch.nn.Linear default U[-1/sqrt(fan_in), ...]."""
    k1, k2, k3, k4 = jax.random.split(key, 4)
    bound1 = 1.0 / jnp.sqrt(2.0)
    w1 = jax.random.uniform(k1, (2, 16), jnp.float32, -bound1, bound1)
    b1 = jax.random.uniform(k2, (1, 16), jnp.float32, -bound1, bound1)
    bound2 = 1.0 / jnp.sqrt(16.0)
    w2 = jax.random.uniform(k3, (16, 1), jnp.float32, -bound2, bound2)
    b2 = jax.random.uniform(k4, (1, 1), jnp.float32, -bound2, bound2)
    # self.sigma = nn.Parameter(tensor(0.1)) — unused in forward, kept for parity.
    sigma = jnp.float32(0.1)
    return w1, b1, w2, b2, sigma


if __name__ == "__main__":
    key = jax.random.PRNGKey(0)
    pkey, k1, k2, k3 = jax.random.split(key, 4)

    w1, b1, w2, b2, sigma = init_params(pkey)

    def reference(xv):
        h = jnp.maximum(xv @ w1 + b1, 0.0)
        return jnp.squeeze(jax.nn.softplus(h @ w2 + b2))

    # 1) tiny N: auto path takes the fused-XLA fast path.
    x_small = jax.random.normal(k1, (8, 2), dtype=jnp.float32)
    y_small = length_model_forward(x_small, w1, b1, w2, b2)
    jax.block_until_ready(y_small)
    assert y_small.shape == (8,)
    assert jnp.allclose(y_small, reference(x_small), atol=1e-5, rtol=1e-5)

    # 2) small N forced through the Pallas kernel (exercises ragged-tail padding).
    x_ragged = jax.random.normal(k2, (300, 2), dtype=jnp.float32)
    y_ragged = length_model_forward(x_ragged, w1, b1, w2, b2, use_pallas=True)
    jax.block_until_ready(y_ragged)
    assert y_ragged.shape == (300,)
    assert jnp.allclose(y_ragged, reference(x_ragged), atol=1e-5, rtol=1e-5)

    # 3) moderate N: auto path hits the kernel with >= 2 grid steps (megacore).
    x_big = jax.random.normal(k3, (20000, 2), dtype=jnp.float32)
    y_big = length_model_forward(x_big, w1, b1, w2, b2)
    jax.block_until_ready(y_big)
    assert y_big.shape == (20000,)
    assert jnp.allclose(y_big, reference(x_big), atol=1e-5, rtol=1e-5)

    print("KERNEL_OK")
</pallas_src>

<mosaic_0001>
module attributes {stable_mosaic.version = 11 : i64} {
  func.func @length_model_kernel(%arg0: i32, %arg1: memref<65xf32, #tpu.memory_space<smem>>, %arg2: memref<2x64x128xf32, #tpu.memory_space<vmem>>, %arg3: memref<64x128xf32, #tpu.memory_space<vmem>>) attributes {dimension_semantics = [#tpu.dimension_semantics<parallel>], iteration_bounds = array<i64: 1>, scalar_prefetch = 0 : i64, scratch_operands = 0 : i64, tpu.core_type = #tpu.core_type<tc>, window_params = [{transform_indices = @transform_0, window_bounds = array<i64: 65>}, {transform_indices = @transform_1, window_bounds = array<i64: 2, 64, 128>}, {transform_indices = @transform_2, window_bounds = array<i64: 64, 128>}]} {
    %c0_i32 = arith.constant 0 : i32
    %c64_i32 = arith.constant 64 : i32
    %0 = arith.muli %c0_i32, %c64_i32 : i32
    %1 = tpu.assume_multiple %0, 64 : i32
    %c0 = arith.constant 0 : index
    %2 = arith.index_cast %1 : i32 to index
    %c0_0 = arith.constant 0 : index
    %3 = vector.load %arg2[%c0, %2, %c0_0] : memref<2x64x128xf32, #tpu.memory_space<vmem>>, vector<1x64x128xf32>
    %4 = vector.shape_cast %3 : vector<1x64x128xf32> to vector<64x128xf32>
    %c1 = arith.constant 1 : index
    %5 = arith.index_cast %1 : i32 to index
    %c0_1 = arith.constant 0 : index
    %6 = vector.load %arg2[%c1, %5, %c0_1] : memref<2x64x128xf32, #tpu.memory_space<vmem>>, vector<1x64x128xf32>
    %7 = vector.shape_cast %6 : vector<1x64x128xf32> to vector<64x128xf32>
    %cst = arith.constant 0.000000e+00 : f32
    %8 = vector.broadcast %cst : f32 to vector<64x128xf32>
    %c0_2 = arith.constant 0 : index
    %9 = memref.load %arg1[%c0_2] : memref<65xf32, #tpu.memory_space<smem>>
    %c16 = arith.constant 16 : index
    %10 = memref.load %arg1[%c16] : memref<65xf32, #tpu.memory_space<smem>>
    %c32 = arith.constant 32 : index
    %11 = memref.load %arg1[%c32] : memref<65xf32, #tpu.memory_space<smem>>
    %c48 = arith.constant 48 : index
    %12 = memref.load %arg1[%c48] : memref<65xf32, #tpu.memory_space<smem>>
    %13 = vector.broadcast %9 : f32 to vector<64x128xf32>
    %14 = arith.mulf %4, %13 : vector<64x128xf32>
    %15 = vector.broadcast %10 : f32 to vector<64x128xf32>
    %16 = arith.mulf %7, %15 : vector<64x128xf32>
    %17 = arith.addf %14, %16 : vector<64x128xf32>
    %18 = vector.broadcast %11 : f32 to vector<64x128xf32>
    %19 = arith.addf %17, %18 : vector<64x128xf32>
    %cst_3 = arith.constant 0.000000e+00 : f32
    %20 = vector.broadcast %cst_3 : f32 to vector<64x128xf32>
    %21 = arith.maximumf %19, %20 : vector<64x128xf32>
    %22 = vector.broadcast %12 : f32 to vector<64x128xf32>
    %23 = arith.mulf %21, %22 : vector<64x128xf32>
    %24 = arith.addf %8, %23 : vector<64x128xf32>
    %c1_4 = arith.constant 1 : index
    %25 = memref.load %arg1[%c1_4] : memref<65xf32, #tpu.memory_space<smem>>
    %c17 = arith.constant 17 : index
    %26 = memref.load %arg1[%c17] : memref<65xf32, #tpu.memory_space<smem>>
    %c33 = arith.constant 33 : index
    %27 = memref.load %arg1[%c33] : memref<65xf32, #tpu.memory_space<smem>>
    %c49 = arith.constant 49 : index
    %28 = memref.load %arg1[%c49] : memref<65xf32, #tpu.memory_space<smem>>
    %29 = vector.broadcast %25 : f32 to vector<64x128xf32>
    %30 = arith.mulf %4, %29 : vector<64x128xf32>
    %31 = vector.broadcast %26 : f32 to vector<64x128xf32>
    %32 = arith.mulf %7, %31 : vector<64x128xf32>
    %33 = arith.addf %30, %32 : vector<64x128xf32>
    %34 = vector.broadcast %27 : f32 to vector<64x128xf32>
    %35 = arith.addf %33, %34 : vector<64x128xf32>
    %cst_5 = arith.constant 0.000000e+00 : f32
    %36 = vector.broadcast %cst_5 : f32 to vector<64x128xf32>
    %37 = arith.maximumf %35, %36 : vector<64x128xf32>
    %38 = vector.broadcast %28 : f32 to vector<64x128xf32>
    %39 = arith.mulf %37, %38 : vector<64x128xf32>
    %40 = arith.addf %24, %39 : vector<64x128xf32>
    %c2 = arith.constant 2 : index
    %41 = memref.load %arg1[%c2] : memref<65xf32, #tpu.memory_space<smem>>
    %c18 = arith.constant 18 : index
    %42 = memref.load %arg1[%c18] : memref<65xf32, #tpu.memory_space<smem>>
    %c34 = arith.constant 34 : index
    %43 = memref.load %arg1[%c34] : memref<65xf32, #tpu.memory_space<smem>>
    %c50 = arith.constant 50 : index
    %44 = memref.load %arg1[%c50] : memref<65xf32, #tpu.memory_space<smem>>
    %45 = vector.broadcast %41 : f32 to vector<64x128xf32>
    %46 = arith.mulf %4, %45 : vector<64x128xf32>
    %47 = vector.broadcast %42 : f32 to vector<64x128xf32>
    %48 = arith.mulf %7, %47 : vector<64x128xf32>
    %49 = arith.addf %46, %48 : vector<64x128xf32>
    %50 = vector.broadcast %43 : f32 to vector<64x128xf32>
    %51 = arith.addf %49, %50 : vector<64x128xf32>
    %cst_6 = arith.constant 0.000000e+00 : f32
    %52 = vector.broadcast %cst_6 : f32 to vector<64x128xf32>
    %53 = arith.maximumf %51, %52 : vector<64x128xf32>
    %54 = vector.broadcast %44 : f32 to vector<64x128xf32>
    %55 = arith.mulf %53, %54 : vector<64x128xf32>
    %56 = arith.addf %40, %55 : vector<64x128xf32>
    %c3 = arith.constant 3 : index
    %57 = memref.load %arg1[%c3] : memref<65xf32, #tpu.memory_space<smem>>
    %c19 = arith.constant 19 : index
    %58 = memref.load %arg1[%c19] : memref<65xf32, #tpu.memory_space<smem>>
    %c35 = arith.constant 35 : index
    %59 = memref.load %arg1[%c35] : memref<65xf32, #tpu.memory_space<smem>>
    %c51 = arith.constant 51 : index
    %60 = memref.load %arg1[%c51] : memref<65xf32, #tpu.memory_space<smem>>
    %61 = vector.broadcast %57 : f32 to vector<64x128xf32>
    %62 = arith.mulf %4, %61 : vector<64x128xf32>
    %63 = vector.broadcast %58 : f32 to vector<64x128xf32>
    %64 = arith.mulf %7, %63 : vector<64x128xf32>
    %65 = arith.addf %62, %64 : vector<64x128xf32>
    %66 = vector.broadcast %59 : f32 to vector<64x128xf32>
    %67 = arith.addf %65, %66 : vector<64x128xf32>
    %cst_7 = arith.constant 0.000000e+00 : f32
    %68 = vector.broadcast %cst_7 : f32 to vector<64x128xf32>
    %69 = arith.maximumf %67, %68 : vector<64x128xf32>
    %70 = vector.broadcast %60 : f32 to vector<64x128xf32>
    %71 = arith.mulf %69, %70 : vector<64x128xf32>
    %72 = arith.addf %56, %71 : vector<64x128xf32>
    %c4 = arith.constant 4 : index
    %73 = memref.load %arg1[%c4] : memref<65xf32, #tpu.memory_space<smem>>
    %c20 = arith.constant 20 : index
    %74 = memref.load %arg1[%c20] : memref<65xf32, #tpu.memory_space<smem>>
    %c36 = arith.constant 36 : index
    %75 = memref.load %arg1[%c36] : memref<65xf32, #tpu.memory_space<smem>>
    %c52 = arith.constant 52 : index
    %76 = memref.load %arg1[%c52] : memref<65xf32, #tpu.memory_space<smem>>
    %77 = vector.broadcast %73 : f32 to vector<64x128xf32>
    %78 = arith.mulf %4, %77 : vector<64x128xf32>
    %79 = vector.broadcast %74 : f32 to vector<64x128xf32>
    %80 = arith.mulf %7, %79 : vector<64x128xf32>
    %81 = arith.addf %78, %80 : vector<64x128xf32>
    %82 = vector.broadcast %75 : f32 to vector<64x128xf32>
    %83 = arith.addf %81, %82 : vector<64x128xf32>
    %cst_8 = arith.constant 0.000000e+00 : f32
    %84 = vector.broadcast %cst_8 : f32 to vector<64x128xf32>
    %85 = arith.maximumf %83, %84 : vector<64x128xf32>
    %86 = vector.broadcast %76 : f32 to vector<64x128xf32>
    %87 = arith.mulf %85, %86 : vector<64x128xf32>
    %88 = arith.addf %72, %87 : vector<64x128xf32>
    %c5 = arith.constant 5 : index
    %89 = memref.load %arg1[%c5] : memref<65xf32, #tpu.memory_space<smem>>
    %c21 = arith.constant 21 : index
    %90 = memref.load %arg1[%c21] : memref<65xf32, #tpu.memory_space<smem>>
    %c37 = arith.constant 37 : index
    %91 = memref.load %arg1[%c37] : memref<65xf32, #tpu.memory_space<smem>>
    %c53 = arith.constant 53 : index
    %92 = memref.load %arg1[%c53] : memref<65xf32, #tpu.memory_space<smem>>
    %93 = vector.broadcast %89 : f32 to vector<64x128xf32>
    %94 = arith.mulf %4, %93 : vector<64x128xf32>
    %95 = vector.broadcast %90 : f32 to vector<64x128xf32>
    %96 = arith.mulf %7, %95 : vector<64x128xf32>
    %97 = arith.addf %94, %96 : vector<64x128xf32>
    %98 = vector.broadcast %91 : f32 to vector<64x128xf32>
    %99 = arith.addf %97, %98 : vector<64x128xf32>
    %cst_9 = arith.constant 0.000000e+00 : f32
    %100 = vector.broadcast %cst_9 : f32 to vector<64x128xf32>
    %101 = arith.maximumf %99, %100 : vector<64x128xf32>
    %102 = vector.broadcast %92 : f32 to vector<64x128xf32>
    %103 = arith.mulf %101, %102 : vector<64x128xf32>
    %104 = arith.addf %88, %103 : vector<64x128xf32>
    %c6 = arith.constant 6 : index
    %105 = memref.load %arg1[%c6] : memref<65xf32, #tpu.memory_space<smem>>
    %c22 = arith.constant 22 : index
    %106 = memref.load %arg1[%c22] : memref<65xf32, #tpu.memory_space<smem>>
    %c38 = arith.constant 38 : index
    %107 = memref.load %arg1[%c38] : memref<65xf32, #tpu.memory_space<smem>>
    %c54 = arith.constant 54 : index
    %108 = memref.load %arg1[%c54] : memref<65xf32, #tpu.memory_space<smem>>
    %109 = vector.broadcast %105 : f32 to vector<64x128xf32>
    %110 = arith.mulf %4, %109 : vector<64x128xf32>
    %111 = vector.broadcast %106 : f32 to vector<64x128xf32>
    %112 = arith.mulf %7, %111 : vector<64x128xf32>
    %113 = arith.addf %110, %112 : vector<64x128xf32>
    %114 = vector.broadcast %107 : f32 to vector<64x128xf32>
    %115 = arith.addf %113, %114 : vector<64x128xf32>
    %cst_10 = arith.constant 0.000000e+00 : f32
    %116 = vector.broadcast %cst_10 : f32 to vector<64x128xf32>
    %117 = arith.maximumf %115, %116 : vector<64x128xf32>
    %118 = vector.broadcast %108 : f32 to vector<64x128xf32>
    %119 = arith.mulf %117, %118 : vector<64x128xf32>
    %120 = arith.addf %104, %119 : vector<64x128xf32>
    %c7 = arith.constant 7 : index
    %121 = memref.load %arg1[%c7] : memref<65xf32, #tpu.memory_space<smem>>
    %c23 = arith.constant 23 : index
    %122 = memref.load %arg1[%c23] : memref<65xf32, #tpu.memory_space<smem>>
    %c39 = arith.constant 39 : index
    %123 = memref.load %arg1[%c39] : memref<65xf32, #tpu.memory_space<smem>>
    %c55 = arith.constant 55 : index
    %124 = memref.load %arg1[%c55] : memref<65xf32, #tpu.memory_space<smem>>
    %125 = vector.broadcast %121 : f32 to vector<64x128xf32>
    %126 = arith.mulf %4, %125 : vector<64x128xf32>
    %127 = vector.broadcast %122 : f32 to vector<64x128xf32>
    %128 = arith.mulf %7, %127 : vector<64x128xf32>
    %129 = arith.addf %126, %128 : vector<64x128xf32>
    %130 = vector.broadcast %123 : f32 to vector<64x128xf32>
    %131 = arith.addf %129, %130 : vector<64x128xf32>
    %cst_11 = arith.constant 0.000000e+00 : f32
    %132 = vector.broadcast %cst_11 : f32 to vector<64x128xf32>
    %133 = arith.maximumf %131, %132 : vector<64x128xf32>
    %134 = vector.broadcast %124 : f32 to vector<64x128xf32>
    %135 = arith.mulf %133, %134 : vector<64x128xf32>
    %136 = arith.addf %120, %135 : vector<64x128xf32>
    %c8 = arith.constant 8 : index
    %137 = memref.load %arg1[%c8] : memref<65xf32, #tpu.memory_space<smem>>
    %c24 = arith.constant 24 : index
    %138 = memref.load %arg1[%c24] : memref<65xf32, #tpu.memory_space<smem>>
    %c40 = arith.constant 40 : index
    %139 = memref.load %arg1[%c40] : memref<65xf32, #tpu.memory_space<smem>>
    %c56 = arith.constant 56 : index
    %140 = memref.load %arg1[%c56] : memref<65xf32, #tpu.memory_space<smem>>
    %141 = vector.broadcast %137 : f32 to vector<64x128xf32>
    %142 = arith.mulf %4, %141 : vector<64x128xf32>
    %143 = vector.broadcast %138 : f32 to vector<64x128xf32>
    %144 = arith.mulf %7, %143 : vector<64x128xf32>
    %145 = arith.addf %142, %144 : vector<64x128xf32>
    %146 = vector.broadcast %139 : f32 to vector<64x128xf32>
    %147 = arith.addf %145, %146 : vector<64x128xf32>
    %cst_12 = arith.constant 0.000000e+00 : f32
    %148 = vector.broadcast %cst_12 : f32 to vector<64x128xf32>
    %149 = arith.maximumf %147, %148 : vector<64x128xf32>
    %150 = vector.broadcast %140 : f32 to vector<64x128xf32>
    %151 = arith.mulf %149, %150 : vector<64x128xf32>
    %152 = arith.addf %136, %151 : vector<64x128xf32>
    %c9 = arith.constant 9 : index
    %153 = memref.load %arg1[%c9] : memref<65xf32, #tpu.memory_space<smem>>
    %c25 = arith.constant 25 : index
    %154 = memref.load %arg1[%c25] : memref<65xf32, #tpu.memory_space<smem>>
    %c41 = arith.constant 41 : index
    %155 = memref.load %arg1[%c41] : memref<65xf32, #tpu.memory_space<smem>>
    %c57 = arith.constant 57 : index
    %156 = memref.load %arg1[%c57] : memref<65xf32, #tpu.memory_space<smem>>
    %157 = vector.broadcast %153 : f32 to vector<64x128xf32>
    %158 = arith.mulf %4, %157 : vector<64x128xf32>
    %159 = vector.broadcast %154 : f32 to vector<64x128xf32>
    %160 = arith.mulf %7, %159 : vector<64x128xf32>
    %161 = arith.addf %158, %160 : vector<64x128xf32>
    %162 = vector.broadcast %155 : f32 to vector<64x128xf32>
    %163 = arith.addf %161, %162 : vector<64x128xf32>
    %cst_13 = arith.constant 0.000000e+00 : f32
    %164 = vector.broadcast %cst_13 : f32 to vector<64x128xf32>
    %165 = arith.maximumf %163, %164 : vector<64x128xf32>
    %166 = vector.broadcast %156 : f32 to vector<64x128xf32>
    %167 = arith.mulf %165, %166 : vector<64x128xf32>
    %168 = arith.addf %152, %167 : vector<64x128xf32>
    %c10 = arith.constant 10 : index
    %169 = memref.load %arg1[%c10] : memref<65xf32, #tpu.memory_space<smem>>
    %c26 = arith.constant 26 : index
    %170 = memref.load %arg1[%c26] : memref<65xf32, #tpu.memory_space<smem>>
    %c42 = arith.constant 42 : index
    %171 = memref.load %arg1[%c42] : memref<65xf32, #tpu.memory_space<smem>>
    %c58 = arith.constant 58 : index
    %172 = memref.load %arg1[%c58] : memref<65xf32, #tpu.memory_space<smem>>
    %173 = vector.broadcast %169 : f32 to vector<64x128xf32>
    %174 = arith.mulf %4, %173 : vector<64x128xf32>
    %175 = vector.broadcast %170 : f32 to vector<64x128xf32>
    %176 = arith.mulf %7, %175 : vector<64x128xf32>
    %177 = arith.addf %174, %176 : vector<64x128xf32>
    %178 = vector.broadcast %171 : f32 to vector<64x128xf32>
    %179 = arith.addf %177, %178 : vector<64x128xf32>
    %cst_14 = arith.constant 0.000000e+00 : f32
    %180 = vector.broadcast %cst_14 : f32 to vector<64x128xf32>
    %181 = arith.maximumf %179, %180 : vector<64x128xf32>
    %182 = vector.broadcast %172 : f32 to vector<64x128xf32>
    %183 = arith.mulf %181, %182 : vector<64x128xf32>
    %184 = arith.addf %168, %183 : vector<64x128xf32>
    %c11 = arith.constant 11 : index
    %185 = memref.load %arg1[%c11] : memref<65xf32, #tpu.memory_space<smem>>
    %c27 = arith.constant 27 : index
    %186 = memref.load %arg1[%c27] : memref<65xf32, #tpu.memory_space<smem>>
    %c43 = arith.constant 43 : index
    %187 = memref.load %arg1[%c43] : memref<65xf32, #tpu.memory_space<smem>>
    %c59 = arith.constant 59 : index
    %188 = memref.load %arg1[%c59] : memref<65xf32, #tpu.memory_space<smem>>
    %189 = vector.broadcast %185 : f32 to vector<64x128xf32>
    %190 = arith.mulf %4, %189 : vector<64x128xf32>
    %191 = vector.broadcast %186 : f32 to vector<64x128xf32>
    %192 = arith.mulf %7, %191 : vector<64x128xf32>
    %193 = arith.addf %190, %192 : vector<64x128xf32>
    %194 = vector.broadcast %187 : f32 to vector<64x128xf32>
    %195 = arith.addf %193, %194 : vector<64x128xf32>
    %cst_15 = arith.constant 0.000000e+00 : f32
    %196 = vector.broadcast %cst_15 : f32 to vector<64x128xf32>
    %197 = arith.maximumf %195, %196 : vector<64x128xf32>
    %198 = vector.broadcast %188 : f32 to vector<64x128xf32>
    %199 = arith.mulf %197, %198 : vector<64x128xf32>
    %200 = arith.addf %184, %199 : vector<64x128xf32>
    %c12 = arith.constant 12 : index
    %201 = memref.load %arg1[%c12] : memref<65xf32, #tpu.memory_space<smem>>
    %c28 = arith.constant 28 : index
    %202 = memref.load %arg1[%c28] : memref<65xf32, #tpu.memory_space<smem>>
    %c44 = arith.constant 44 : index
    %203 = memref.load %arg1[%c44] : memref<65xf32, #tpu.memory_space<smem>>
    %c60 = arith.constant 60 : index
    %204 = memref.load %arg1[%c60] : memref<65xf32, #tpu.memory_space<smem>>
    %205 = vector.broadcast %201 : f32 to vector<64x128xf32>
    %206 = arith.mulf %4, %205 : vector<64x128xf32>
    %207 = vector.broadcast %202 : f32 to vector<64x128xf32>
    %208 = arith.mulf %7, %207 : vector<64x128xf32>
    %209 = arith.addf %206, %208 : vector<64x128xf32>
    %210 = vector.broadcast %203 : f32 to vector<64x128xf32>
    %211 = arith.addf %209, %210 : vector<64x128xf32>
    %cst_16 = arith.constant 0.000000e+00 : f32
    %212 = vector.broadcast %cst_16 : f32 to vector<64x128xf32>
    %213 = arith.maximumf %211, %212 : vector<64x128xf32>
    %214 = vector.broadcast %204 : f32 to vector<64x128xf32>
    %215 = arith.mulf %213, %214 : vector<64x128xf32>
    %216 = arith.addf %200, %215 : vector<64x128xf32>
    %c13 = arith.constant 13 : index
    %217 = memref.load %arg1[%c13] : memref<65xf32, #tpu.memory_space<smem>>
    %c29 = arith.constant 29 : index
    %218 = memref.load %arg1[%c29] : memref<65xf32, #tpu.memory_space<smem>>
    %c45 = arith.constant 45 : index
    %219 = memref.load %arg1[%c45] : memref<65xf32, #tpu.memory_space<smem>>
    %c61 = arith.constant 61 : index
    %220 = memref.load %arg1[%c61] : memref<65xf32, #tpu.memory_space<smem>>
    %221 = vector.broadcast %217 : f32 to vector<64x128xf32>
    %222 = arith.mulf %4, %221 : vector<64x128xf32>
    %223 = vector.broadcast %218 : f32 to vector<64x128xf32>
    %224 = arith.mulf %7, %223 : vector<64x128xf32>
    %225 = arith.addf %222, %224 : vector<64x128xf32>
    %226 = vector.broadcast %219 : f32 to vector<64x128xf32>
    %227 = arith.addf %225, %226 : vector<64x128xf32>
    %cst_17 = arith.constant 0.000000e+00 : f32
    %228 = vector.broadcast %cst_17 : f32 to vector<64x128xf32>
    %229 = arith.maximumf %227, %228 : vector<64x128xf32>
    %230 = vector.broadcast %220 : f32 to vector<64x128xf32>
    %231 = arith.mulf %229, %230 : vector<64x128xf32>
    %232 = arith.addf %216, %231 : vector<64x128xf32>
    %c14 = arith.constant 14 : index
    %233 = memref.load %arg1[%c14] : memref<65xf32, #tpu.memory_space<smem>>
    %c30 = arith.constant 30 : index
    %234 = memref.load %arg1[%c30] : memref<65xf32, #tpu.memory_space<smem>>
    %c46 = arith.constant 46 : index
    %235 = memref.load %arg1[%c46] : memref<65xf32, #tpu.memory_space<smem>>
    %c62 = arith.constant 62 : index
    %236 = memref.load %arg1[%c62] : memref<65xf32, #tpu.memory_space<smem>>
    %237 = vector.broadcast %233 : f32 to vector<64x128xf32>
    %238 = arith.mulf %4, %237 : vector<64x128xf32>
    %239 = vector.broadcast %234 : f32 to vector<64x128xf32>
    %240 = arith.mulf %7, %239 : vector<64x128xf32>
    %241 = arith.addf %238, %240 : vector<64x128xf32>
    %242 = vector.broadcast %235 : f32 to vector<64x128xf32>
    %243 = arith.addf %241, %242 : vector<64x128xf32>
    %cst_18 = arith.constant 0.000000e+00 : f32
    %244 = vector.broadcast %cst_18 : f32 to vector<64x128xf32>
    %245 = arith.maximumf %243, %244 : vector<64x128xf32>
    %246 = vector.broadcast %236 : f32 to vector<64x128xf32>
    %247 = arith.mulf %245, %246 : vector<64x128xf32>
    %248 = arith.addf %232, %247 : vector<64x128xf32>
    %c15 = arith.constant 15 : index
    %249 = memref.load %arg1[%c15] : memref<65xf32, #tpu.memory_space<smem>>
    %c31 = arith.constant 31 : index
    %250 = memref.load %arg1[%c31] : memref<65xf32, #tpu.memory_space<smem>>
    %c47 = arith.constant 47 : index
    %251 = memref.load %arg1[%c47] : memref<65xf32, #tpu.memory_space<smem>>
    %c63 = arith.constant 63 : index
    %252 = memref.load %arg1[%c63] : memref<65xf32, #tpu.memory_space<smem>>
    %253 = vector.broadcast %249 : f32 to vector<64x128xf32>
    %254 = arith.mulf %4, %253 : vector<64x128xf32>
    %255 = vector.broadcast %250 : f32 to vector<64x128xf32>
    %256 = arith.mulf %7, %255 : vector<64x128xf32>
    %257 = arith.addf %254, %256 : vector<64x128xf32>
    %258 = vector.broadcast %251 : f32 to vector<64x128xf32>
    %259 = arith.addf %257, %258 : vector<64x128xf32>
    %cst_19 = arith.constant 0.000000e+00 : f32
    %260 = vector.broadcast %cst_19 : f32 to vector<64x128xf32>
    %261 = arith.maximumf %259, %260 : vector<64x128xf32>
    %262 = vector.broadcast %252 : f32 to vector<64x128xf32>
    %263 = arith.mulf %261, %262 : vector<64x128xf32>
    %264 = arith.addf %248, %263 : vector<64x128xf32>
    %c64 = arith.constant 64 : index
    %265 = memref.load %arg1[%c64] : memref<65xf32, #tpu.memory_space<smem>>
    %266 = vector.broadcast %265 : f32 to vector<64x128xf32>
    %267 = arith.addf %264, %266 : vector<64x128xf32>
    %cst_20 = arith.constant 0.000000e+00 : f32
    %268 = vector.broadcast %cst_20 : f32 to vector<64x128xf32>
    %269 = arith.maximumf %267, %268 : vector<64x128xf32>
    %270 = math.absf %267 : vector<64x128xf32>
    %cst_21 = arith.constant 0.000000e+00 : f32
    %271 = vector.broadcast %cst_21 : f32 to vector<64x128xf32>
    %272 = arith.subf %271, %270 : vector<64x128xf32>
    %273 = math.exp %272 : vector<64x128xf32>
    %274 = math.log1p %273 : vector<64x128xf32>
    %275 = arith.addf %269, %274 : vector<64x128xf32>
    %276 = arith.index_cast %1 : i32 to index
    %c0_22 = arith.constant 0 : index
    %277 = vector.load %arg3[%276, %c0_22] : memref<64x128xf32, #tpu.memory_space<vmem>>, vector<64x128xf32>
    tpu.vector_store %arg3[%276, %c0_22], %275 {strides = array<i32>} : memref<64x128xf32, #tpu.memory_space<vmem>>, vector<64x128xf32>,
    %c1_i32 = arith.constant 1 : i32
    return
  }
  func.func @transform_0(%arg0: i32) -> i32 {
    %c0_i32 = arith.constant 0 : i32
    %c0_i32_0 = arith.constant 0 : i32
    return %c0_i32 : i32
  }
  func.func @transform_1(%arg0: i32) -> (i32, i32, i32) {
    %c0_i32 = arith.constant 0 : i32
    %c0_i32_0 = arith.constant 0 : i32
    %c0_i32_1 = arith.constant 0 : i32
    return %c0_i32, %arg0, %c0_i32_0 : i32, i32, i32
  }
  func.func @transform_2(%arg0: i32) -> (i32, i32) {
    %c0_i32 = arith.constant 0 : i32
    %c0_i32_0 = arith.constant 0 : i32
    return %arg0, %c0_i32 : i32, i32
  }
}

</mosaic_0001>

<bundles_post_ra>
// kernel: tpu_custom_call.1
= control target key start
LH: loop header
LB: loop body
LE: loop exit
PB: predicated region body
PF: predicated region fallthrough
CT: control target
= control target key end

     0   :  { %7 = vsyncpa [#allocation5], 0  ;;  %s2380_s0 = inlined_call_operand.hbm [shape: f32[65], index: 0, kind: input, shape index: {}]   ;;  %s2381_s1 = inlined_call_operand.hbm [shape: f32[2,64,128], index: 1, kind: input, shape index: {}]   ;;  %s2382_s2 = inlined_call_operand.hbm [shape: f32[64,128], index: 2, kind: output, shape index: {}]  }
   0x1   :  { %8 = vsyncpa [#allocation3], 0 }
   0x2   :  { %9 = vsyncpa [#allocation4], 0  ;;  %s1407_s9 = smov [#allocation2]   ;;  %s1408_s12 = smov [#allocation6]  }
   0x3   :  { %17 = dma.hbm_to_smem %s2380_s0, 16, %s1407_s9, [#allocation5]  }
   0x4   :  { %s23_s13 = sshll.u32 %s1408_s12, 4  ;;  %s24_s13 = int_to_ptr.vmem [resolvable:$true] %s23_s13 }
   0x5   :  { %s1369_s14 = scalar_lea.vmem %s24_s13, 2048  ;;  %p1374_p1 = scmp.lt.s32.totalorder %s24_s13, %s24_s13 }
   0x6   :  { %p1370_p0 = scmp.ne.s32.totalorder %s24_s13, %s1369_s14  ;;  %p1375_p2 = scmp.lt.s32.totalorder %s1369_s14, %s1369_s14 }
   0x8   :  { %p1376_p3 = por %p1375_p2, %p1374_p1 }
   0xa   :  { %p1377_p4 = pnand %p1376_p3, %p1370_p0 }
   0xc   :  { %1380 = shalt.err (!%p1377_p4)
}
   0xd   :  { %s1409_s15 = smov 128   ;;  %s1410_s16 = smov 8  }
   0xe   :  { %29 = dma.hbm_to_vmem [thread:$0]  %s2381_s1, 2048, %s24_s13, [#allocation3], %s1409_s15, %s1409_s15, %s1410_s16  }
   0xf   :  { %1401 = dma.done.wait [#allocation5], 16  }
  0x10   :  { %1402 = vsyncadd [#allocation5], 4294967280 }
  0x11   :  { %1403 = dma.done.wait [#allocation3], 2048  }
  0x12   :  { %1404 = vsyncadd [#allocation3], 4294965248 }
  0x13   :  { %36 = sfence }
  0x14   :  { %s55_s0 = sld [smem:[#allocation2]]  ;;  %v1436_v0 = vld [vmem:[#allocation6] sm:$0xff]  ;;  %v1438_v1 = vld [vmem:[#allocation6 + $0x8] sm:$0xff]  ;;  %v1440_v2 = vld [vmem:[#allocation6 + $0x10] sm:$0xff] }
  0x15   :  { %s1236_s19 = sld [smem:[#allocation2 + $0x10]]  ;;  %v1442_v3 = vld [vmem:[#allocation6 + $0x18] sm:$0xff]  ;;  %v1444_v4 = vld [vmem:[#allocation6 + $0x20] sm:$0xff]  ;;  %v1446_v5 = vld [vmem:[#allocation6 + $0x28] sm:$0xff] }
  0x16   :  { %s1237_s20 = sld [smem:[#allocation2 + $0x20]]  ;;  %v1448_v6 = vld [vmem:[#allocation6 + $0x30] sm:$0xff]  ;;  %v1450_v7 = vld [vmem:[#allocation6 + $0x38] sm:$0xff]  ;;  %v1452_v8 = vld [vmem:[#allocation6 + $0x40] sm:$0xff] }
  0x17   :  { %s1238_s21 = sld [smem:[#allocation2 + $0x30]]  ;;  %v1454_v9 = vld [vmem:[#allocation6 + $0x48] sm:$0xff]  ;;  %v1456_v11 = vld [vmem:[#allocation6 + $0x50] sm:$0xff]  ;;  %v1458_v12 = vld [vmem:[#allocation6 + $0x58] sm:$0xff] }
  0x18   :  { %v1460_v13 = vld [vmem:[#allocation6 + $0x60] sm:$0xff]  ;;  %v1465_v17 = vld [vmem:[#allocation6 + $0x68] sm:$0xff]  ;;  %v1467_v18 = vld [vmem:[#allocation6 + $0x70] sm:$0xff]  ;;  %s1476_s1 = sld [smem:[#allocation2 + $0x1]] }
  0x19   :  { %v1469_v19 = vld [vmem:[#allocation6 + $0x78] sm:$0xff]  ;;  %s1482_s22 = sld [smem:[#allocation2 + $0x11]] }
  0x1a   :  { %v59_v10 = vstv %s55_s0  ;;  %s1488_s23 = sld [smem:[#allocation2 + $0x21]] }
  0x1b   :  { %v60_v14 = vmul.f32 %v59_v10, %v1436_v0  ;;  %v61_v15 = vmul.f32 %v59_v10, %v1438_v1  ;;  %v62_v16 = vmul.f32 %v59_v10, %v1440_v2  ;;  %v63_v20 = vmul.f32 %v59_v10, %v1442_v3  ;;  %s1490_s24 = sld [smem:[#allocation2 + $0x31]] }
  0x1c   :  { %v64_v21 = vmul.f32 %v59_v10, %v1444_v4  ;;  %v65_v22 = vmul.f32 %v59_v10, %v1446_v5  ;;  %v66_v23 = vmul.f32 %v59_v10, %v1448_v6  ;;  %v67_v24 = vmul.f32 %v59_v10, %v1450_v7  ;;  %s1528_s25 = sld [smem:[#allocation2 + $0x2]] }
  0x1d   :  { %v68_v25 = vstv %s1236_s19  ;;  %v85_v26 = vstv %s1237_s20  ;;  %v102_v27 = vstv %s1238_s21  ;;  %s1530_s26 = sld [smem:[#allocation2 + $0x12]] }
  0x1e   :  { %v69_v28 = vmul.f32 %v68_v25, %v1452_v8  ;;  %v70_v29 = vmul.f32 %v68_v25, %v1454_v9  ;;  %v71_v30 = vmul.f32 %v68_v25, %v1456_v11  ;;  %v72_v31 = vmul.f32 %v68_v25, %v1458_v12  ;;  %s1532_s27 = sld [smem:[#allocation2 + $0x22]] }
  0x1f   :  { %v73_v32 = vmul.f32 %v68_v25, %v1460_v13  ;;  %v74_v33 = vmul.f32 %v68_v25, %v1465_v17  ;;  %v75_v34 = vmul.f32 %v68_v25, %v1467_v18  ;;  %v76_v35 = vmul.f32 %v68_v25, %v1469_v19  ;;  %s1534_s28 = sld [smem:[#allocation2 + $0x32]] }
  0x20   :  { %v77_v36 = vadd.f32 %v69_v28, %v60_v14  ;;  %v78_v37 = vadd.f32 %v70_v29, %v61_v15  ;;  %v79_v38 = vadd.f32 %v71_v30, %v62_v16  ;;  %v80_v39 = vadd.f32 %v72_v31, %v63_v20  ;;  %s1580_s29 = sld [smem:[#allocation2 + $0x3]] }
  0x21   :  { %v81_v40 = vadd.f32 %v73_v32, %v64_v21  ;;  %v82_v41 = vadd.f32 %v74_v33, %v65_v22  ;;  %v83_v42 = vadd.f32 %v75_v34, %v66_v23  ;;  %v84_v43 = vadd.f32 %v76_v35, %v67_v24  ;;  %s1582_s30 = sld [smem:[#allocation2 + $0x13]] }
  0x22   :  { %v86_v44 = vadd.f32 %v85_v26, %v77_v36  ;;  %v87_v45 = vadd.f32 %v85_v26, %v78_v37  ;;  %v88_v46 = vadd.f32 %v85_v26, %v79_v38  ;;  %v89_v47 = vadd.f32 %v85_v26, %v80_v39  ;;  %s1584_s3 = sld [smem:[#allocation2 + $0x23]] }
  0x23   :  { %v90_v48 = vadd.f32 %v85_v26, %v81_v40  ;;  %v91_v49 = vadd.f32 %v85_v26, %v82_v41  ;;  %v92_v50 = vadd.f32 %v85_v26, %v83_v42  ;;  %v93_v51 = vadd.f32 %v85_v26, %v84_v43  ;;  %s1586_s4 = sld [smem:[#allocation2 + $0x33]] }
  0x24   :  { %v94_v52 = vmax.f32 %v86_v44, 0.0  ;;  %v95_v53 = vmax.f32 %v87_v45, 0.0  ;;  %v96_v54 = vmax.f32 %v88_v46, 0.0  ;;  %v97_v55 = vmax.f32 %v89_v47, 0.0  ;;  %s1632_s5 = sld [smem:[#allocation2 + $0x4]] }
  0x25   :  { %v98_v56 = vmax.f32 %v90_v48, 0.0  ;;  %v99_v57 = vmax.f32 %v91_v49, 0.0  ;;  %v100_v58 = vmax.f32 %v92_v50, 0.0  ;;  %v101_v59 = vmax.f32 %v93_v51, 0.0  ;;  %s1634_s6 = sld [smem:[#allocation2 + $0x14]] }
  0x26   :  { %v1492_v60 = vmul.f32 %v102_v27, %v94_v52  ;;  %v1494_v61 = vmul.f32 %v102_v27, %v95_v53  ;;  %v1496_v62 = vmul.f32 %v102_v27, %v96_v54  ;;  %v1498_v63 = vmul.f32 %v102_v27, %v97_v55  ;;  %s1636_s7 = sld [smem:[#allocation2 + $0x24]] }
  0x27   :  { %v1500_v10 = vmul.f32 %v102_v27, %v98_v56  ;;  %v1502_v14 = vmul.f32 %v102_v27, %v99_v57  ;;  %v1504_v15 = vmul.f32 %v102_v27, %v100_v58  ;;  %v1506_v16 = vmul.f32 %v102_v27, %v101_v59  ;;  %s1638_s8 = sld [smem:[#allocation2 + $0x34]] }
  0x28   :  { %v123_v20 = vstv %s1476_s1  ;;  %v132_v21 = vstv %s1482_s22  ;;  %v149_v22 = vstv %s1488_s23  ;;  %v166_v23 = vstv %s1490_s24  ;;  %s1684_s9 = sld [smem:[#allocation2 + $0x5]] }
  0x29   :  { %v124_v24 = vmul.f32 %v123_v20, %v1436_v0  ;;  %v125_v25 = vmul.f32 %v123_v20, %v1438_v1  ;;  %v126_v26 = vmul.f32 %v123_v20, %v1440_v2  ;;  %v127_v28 = vmul.f32 %v123_v20, %v1442_v3  ;;  %s1686_s10 = sld [smem:[#allocation2 + $0x15]] }
  0x2a   :  { %v128_v29 = vmul.f32 %v123_v20, %v1444_v4  ;;  %v129_v30 = vmul.f32 %v123_v20, %v1446_v5  ;;  %v130_v31 = vmul.f32 %v123_v20, %v1448_v6  ;;  %v131_v27 = vmul.f32 %v123_v20, %v1450_v7  ;;  %s1688_s11 = sld [smem:[#allocation2 + $0x25]] }
  0x2b   :  { %v133_v32 = vmul.f32 %v132_v21, %v1452_v8  ;;  %v134_v33 = vmul.f32 %v132_v21, %v1454_v9  ;;  %v135_v34 = vmul.f32 %v132_v21, %v1456_v11  ;;  %v136_v35 = vmul.f32 %v132_v21, %v1458_v12  ;;  %s1690_s12 = sld [smem:[#allocation2 + $0x35]] }
  0x2c   :  { %v137_v36 = vmul.f32 %v132_v21, %v1460_v13  ;;  %v138_v37 = vmul.f32 %v132_v21, %v1465_v17  ;;  %v139_v38 = vmul.f32 %v132_v21, %v1467_v18  ;;  %v140_v39 = vmul.f32 %v132_v21, %v1469_v19  ;;  %s1736_s13 = sld [smem:[#allocation2 + $0x6]] }
  0x2d   :  { %v141_v40 = vadd.f32 %v133_v32, %v124_v24  ;;  %v142_v41 = vadd.f32 %v134_v33, %v125_v25  ;;  %v143_v42 = vadd.f32 %v135_v34, %v126_v26  ;;  %v144_v43 = vadd.f32 %v136_v35, %v127_v28  ;;  %s1738_s14 = sld [smem:[#allocation2 + $0x16]] }
  0x2e   :  { %v145_v44 = vadd.f32 %v137_v36, %v128_v29  ;;  %v146_v45 = vadd.f32 %v138_v37, %v129_v30  ;;  %v147_v46 = vadd.f32 %v139_v38, %v130_v31  ;;  %v148_v47 = vadd.f32 %v140_v39, %v131_v27  ;;  %s1740_s17 = sld [smem:[#allocation2 + $0x26]] }
  0x2f   :  { %v150_v48 = vadd.f32 %v149_v22, %v141_v40  ;;  %v151_v49 = vadd.f32 %v149_v22, %v142_v41  ;;  %v152_v50 = vadd.f32 %v149_v22, %v143_v42  ;;  %v153_v51 = vadd.f32 %v149_v22, %v144_v43  ;;  %s1742_s18 = sld [smem:[#allocation2 + $0x36]] }
  0x30   :  { %v154_v52 = vadd.f32 %v149_v22, %v145_v44  ;;  %v155_v53 = vadd.f32 %v149_v22, %v146_v45  ;;  %v156_v54 = vadd.f32 %v149_v22, %v147_v46  ;;  %v157_v55 = vadd.f32 %v149_v22, %v148_v47  ;;  %s1788_s0 = sld [smem:[#allocation2 + $0x7]] }
  0x31   :  { %v158_v56 = vmax.f32 %v150_v48, 0.0  ;;  %v159_v57 = vmax.f32 %v151_v49, 0.0  ;;  %v160_v58 = vmax.f32 %v152_v50, 0.0  ;;  %v161_v59 = vmax.f32 %v153_v51, 0.0  ;;  %s1790_s19 = sld [smem:[#allocation2 + $0x17]] }
  0x32   :  { %v162_v20 = vmax.f32 %v154_v52, 0.0  ;;  %v163_v21 = vmax.f32 %v155_v53, 0.0  ;;  %v164_v24 = vmax.f32 %v156_v54, 0.0  ;;  %v165_v25 = vmax.f32 %v157_v55, 0.0  ;;  %s1792_s20 = sld [smem:[#allocation2 + $0x27]] }
  0x33   :  { %v167_v26 = vmul.f32 %v166_v23, %v158_v56  ;;  %v168_v28 = vmul.f32 %v166_v23, %v159_v57  ;;  %v169_v29 = vmul.f32 %v166_v23, %v160_v58  ;;  %v170_v30 = vmul.f32 %v166_v23, %v161_v59  ;;  %s1794_s21 = sld [smem:[#allocation2 + $0x37]] }
  0x34   :  { %v171_v31 = vmul.f32 %v166_v23, %v162_v20  ;;  %v172_v27 = vmul.f32 %v166_v23, %v163_v21  ;;  %v173_v32 = vmul.f32 %v166_v23, %v164_v24  ;;  %v174_v22 = vmul.f32 %v166_v23, %v165_v25  ;;  %s1840_s1 = sld [smem:[#allocation2 + $0x8]] }
  0x35   :  { %v1537_v33 = vadd.f32 %v167_v26, %v1492_v60  ;;  %v1540_v34 = vadd.f32 %v168_v28, %v1494_v61  ;;  %v1543_v35 = vadd.f32 %v169_v29, %v1496_v62  ;;  %v1546_v36 = vadd.f32 %v170_v30, %v1498_v63  ;;  %s1842_s22 = sld [smem:[#allocation2 + $0x18]] }
  0x36   :  { %v1549_v37 = vadd.f32 %v171_v31, %v1500_v10  ;;  %v1552_v38 = vadd.f32 %v172_v27, %v1502_v14  ;;  %v1555_v23 = vadd.f32 %v173_v32, %v1504_v15  ;;  %v1558_v60 = vadd.f32 %v174_v22, %v1506_v16  ;;  %s1844_s23 = sld [smem:[#allocation2 + $0x28]] }
  0x37   :  { %v187_v61 = vstv %s1528_s25  ;;  %v196_v39 = vstv %s1530_s26  ;;  %v213_v40 = vstv %s1532_s27  ;;  %v230_v62 = vstv %s1534_s28  ;;  %s1846_s24 = sld [smem:[#allocation2 + $0x38]] }
  0x38   :  { %v188_v41 = vmul.f32 %v187_v61, %v1436_v0  ;;  %v189_v63 = vmul.f32 %v187_v61, %v1438_v1  ;;  %v190_v10 = vmul.f32 %v187_v61, %v1440_v2  ;;  %v191_v42 = vmul.f32 %v187_v61, %v1442_v3  ;;  %s1926_s25 = sld [smem:[#allocation2 + $0x9]] }
  0x39   :  { %v192_v14 = vmul.f32 %v187_v61, %v1444_v4  ;;  %v193_v15 = vmul.f32 %v187_v61, %v1446_v5  ;;  %v194_v43 = vmul.f32 %v187_v61, %v1448_v6  ;;  %v195_v16 = vmul.f32 %v187_v61, %v1450_v7  ;;  %s1928_s26 = sld [smem:[#allocation2 + $0x19]] }
  0x3a   :  { %v197_v44 = vmul.f32 %v196_v39, %v1452_v8  ;;  %v198_v45 = vmul.f32 %v196_v39, %v1454_v9  ;;  %v199_v46 = vmul.f32 %v196_v39, %v1456_v11  ;;  %v200_v47 = vmul.f32 %v196_v39, %v1458_v12  ;;  %s1930_s27 = sld [smem:[#allocation2 + $0x29]] }
  0x3b   :  { %v201_v48 = vmul.f32 %v196_v39, %v1460_v13  ;;  %v202_v49 = vmul.f32 %v196_v39, %v1465_v17  ;;  %v203_v50 = vmul.f32 %v196_v39, %v1467_v18  ;;  %v204_v51 = vmul.f32 %v196_v39, %v1469_v19  ;;  %s1932_s28 = sld [smem:[#allocation2 + $0x39]] }
  0x3c   :  { %v205_v52 = vadd.f32 %v197_v44, %v188_v41  ;;  %v206_v53 = vadd.f32 %v198_v45, %v189_v63  ;;  %v207_v54 = vadd.f32 %v199_v46, %v190_v10  ;;  %v208_v55 = vadd.f32 %v200_v47, %v191_v42 }
  0x3d   :  { %v209_v56 = vadd.f32 %v201_v48, %v192_v14  ;;  %v210_v57 = vadd.f32 %v202_v49, %v193_v15  ;;  %v211_v58 = vadd.f32 %v203_v50, %v194_v43  ;;  %v212_v59 = vadd.f32 %v204_v51, %v195_v16 }
  0x3e   :  { %v214_v20 = vadd.f32 %v213_v40, %v205_v52  ;;  %v215_v21 = vadd.f32 %v213_v40, %v206_v53  ;;  %v216_v24 = vadd.f32 %v213_v40, %v207_v54  ;;  %v217_v25 = vadd.f32 %v213_v40, %v208_v55 }
  0x3f   :  { %v218_v26 = vadd.f32 %v213_v40, %v209_v56  ;;  %v219_v28 = vadd.f32 %v213_v40, %v210_v57  ;;  %v220_v29 = vadd.f32 %v213_v40, %v211_v58  ;;  %v221_v30 = vadd.f32 %v213_v40, %v212_v59 }
  0x40   :  { %v222_v31 = vmax.f32 %v214_v20, 0.0  ;;  %v223_v27 = vmax.f32 %v215_v21, 0.0  ;;  %v224_v32 = vmax.f32 %v216_v24, 0.0  ;;  %v225_v22 = vmax.f32 %v217_v25, 0.0 }
  0x41   :  { %v226_v61 = vmax.f32 %v218_v26, 0.0  ;;  %v227_v39 = vmax.f32 %v219_v28, 0.0  ;;  %v228_v41 = vmax.f32 %v220_v29, 0.0  ;;  %v229_v63 = vmax.f32 %v221_v30, 0.0 }
  0x42   :  { %v231_v10 = vmul.f32 %v230_v62, %v222_v31  ;;  %v232_v42 = vmul.f32 %v230_v62, %v223_v27  ;;  %v233_v14 = vmul.f32 %v230_v62, %v224_v32  ;;  %v234_v15 = vmul.f32 %v230_v62, %v225_v22 }
  0x43   :  { %v235_v43 = vmul.f32 %v230_v62, %v226_v61  ;;  %v236_v16 = vmul.f32 %v230_v62, %v227_v39  ;;  %v237_v44 = vmul.f32 %v230_v62, %v228_v41  ;;  %v238_v40 = vmul.f32 %v230_v62, %v229_v63 }
  0x44   :  { %v1589_v45 = vadd.f32 %v231_v10, %v1537_v33  ;;  %v1592_v46 = vadd.f32 %v232_v42, %v1540_v34  ;;  %v1595_v47 = vadd.f32 %v233_v14, %v1543_v35  ;;  %v1598_v48 = vadd.f32 %v234_v15, %v1546_v36 }
  0x45   :  { %v1601_v49 = vadd.f32 %v235_v43, %v1549_v37  ;;  %v1604_v50 = vadd.f32 %v236_v16, %v1552_v38  ;;  %v1607_v62 = vadd.f32 %v237_v44, %v1555_v23  ;;  %v1610_v33 = vadd.f32 %v238_v40, %v1558_v60 }
  0x46   :  { %v251_v34 = vstv %s1580_s29  ;;  %v260_v51 = vstv %s1582_s30  ;;  %v277_v52 = vstv %s1584_s3  ;;  %v294_v35 = vstv %s1586_s4  ;;  %s1986_s29 = sld [smem:[#allocation2 + $0xa]] }
  0x47   :  { %v252_v53 = vmul.f32 %v251_v34, %v1436_v0  ;;  %v253_v36 = vmul.f32 %v251_v34, %v1438_v1  ;;  %v254_v37 = vmul.f32 %v251_v34, %v1440_v2  ;;  %v255_v54 = vmul.f32 %v251_v34, %v1442_v3  ;;  %s1988_s30 = sld [smem:[#allocation2 + $0x1a]] }
  0x48   :  { %v256_v38 = vmul.f32 %v251_v34, %v1444_v4  ;;  %v257_v23 = vmul.f32 %v251_v34, %v1446_v5  ;;  %v258_v55 = vmul.f32 %v251_v34, %v1448_v6  ;;  %v259_v60 = vmul.f32 %v251_v34, %v1450_v7  ;;  %s1990_s3 = sld [smem:[#allocation2 + $0x2a]] }
  0x49   :  { %v261_v56 = vmul.f32 %v260_v51, %v1452_v8  ;;  %v262_v57 = vmul.f32 %v260_v51, %v1454_v9  ;;  %v263_v58 = vmul.f32 %v260_v51, %v1456_v11  ;;  %v264_v59 = vmul.f32 %v260_v51, %v1458_v12  ;;  %s1992_s4 = sld [smem:[#allocation2 + $0x3a]] }
  0x4a   :  { %v265_v20 = vmul.f32 %v260_v51, %v1460_v13  ;;  %v266_v21 = vmul.f32 %v260_v51, %v1465_v17  ;;  %v267_v24 = vmul.f32 %v260_v51, %v1467_v18  ;;  %v268_v25 = vmul.f32 %v260_v51, %v1469_v19 }
  0x4b   :  { %v269_v26 = vadd.f32 %v261_v56, %v252_v53  ;;  %v270_v28 = vadd.f32 %v262_v57, %v253_v36  ;;  %v271_v29 = vadd.f32 %v263_v58, %v254_v37  ;;  %v272_v30 = vadd.f32 %v264_v59, %v255_v54 }
  0x4c   :  { %v273_v31 = vadd.f32 %v265_v20, %v256_v38  ;;  %v274_v27 = vadd.f32 %v266_v21, %v257_v23  ;;  %v275_v32 = vadd.f32 %v267_v24, %v258_v55  ;;  %v276_v22 = vadd.f32 %v268_v25, %v259_v60 }
  0x4d   :  { %v278_v61 = vadd.f32 %v277_v52, %v269_v26  ;;  %v279_v39 = vadd.f32 %v277_v52, %v270_v28  ;;  %v280_v41 = vadd.f32 %v277_v52, %v271_v29  ;;  %v281_v63 = vadd.f32 %v277_v52, %v272_v30 }
  0x4e   :  { %v282_v10 = vadd.f32 %v277_v52, %v273_v31  ;;  %v283_v42 = vadd.f32 %v277_v52, %v274_v27  ;;  %v284_v14 = vadd.f32 %v277_v52, %v275_v32  ;;  %v285_v15 = vadd.f32 %v277_v52, %v276_v22 }
  0x4f   :  { %v286_v43 = vmax.f32 %v278_v61, 0.0  ;;  %v287_v16 = vmax.f32 %v279_v39, 0.0  ;;  %v288_v44 = vmax.f32 %v280_v41, 0.0  ;;  %v289_v40 = vmax.f32 %v281_v63, 0.0 }
  0x50   :  { %v290_v34 = vmax.f32 %v282_v10, 0.0  ;;  %v291_v51 = vmax.f32 %v283_v42, 0.0  ;;  %v292_v53 = vmax.f32 %v284_v14, 0.0  ;;  %v293_v36 = vmax.f32 %v285_v15, 0.0 }
  0x51   :  { %v295_v37 = vmul.f32 %v294_v35, %v286_v43  ;;  %v296_v54 = vmul.f32 %v294_v35, %v287_v16  ;;  %v297_v38 = vmul.f32 %v294_v35, %v288_v44  ;;  %v298_v23 = vmul.f32 %v294_v35, %v289_v40 }
  0x52   :  { %v299_v55 = vmul.f32 %v294_v35, %v290_v34  ;;  %v300_v60 = vmul.f32 %v294_v35, %v291_v51  ;;  %v301_v56 = vmul.f32 %v294_v35, %v292_v53  ;;  %v302_v52 = vmul.f32 %v294_v35, %v293_v36 }
  0x53   :  { %v1641_v57 = vadd.f32 %v295_v37, %v1589_v45  ;;  %v1644_v58 = vadd.f32 %v296_v54, %v1592_v46  ;;  %v1647_v59 = vadd.f32 %v297_v38, %v1595_v47  ;;  %v1650_v20 = vadd.f32 %v298_v23, %v1598_v48 }
  0x54   :  { %v1653_v21 = vadd.f32 %v299_v55, %v1601_v49  ;;  %v1656_v24 = vadd.f32 %v300_v60, %v1604_v50  ;;  %v1659_v35 = vadd.f32 %v301_v56, %v1607_v62  ;;  %v1662_v45 = vadd.f32 %v302_v52, %v1610_v33 }
  0x55   :  { %v315_v46 = vstv %s1632_s5  ;;  %v324_v25 = vstv %s1634_s6  ;;  %v341_v26 = vstv %s1636_s7  ;;  %v358_v47 = vstv %s1638_s8  ;;  %s2038_s5 = sld [smem:[#allocation2 + $0xb]] }
  0x56   :  { %v316_v28 = vmul.f32 %v315_v46, %v1436_v0  ;;  %v317_v48 = vmul.f32 %v315_v46, %v1438_v1  ;;  %v318_v49 = vmul.f32 %v315_v46, %v1440_v2  ;;  %v319_v29 = vmul.f32 %v315_v46, %v1442_v3  ;;  %s2040_s6 = sld [smem:[#allocation2 + $0x1b]] }
  0x57   :  { %v320_v50 = vmul.f32 %v315_v46, %v1444_v4  ;;  %v321_v62 = vmul.f32 %v315_v46, %v1446_v5  ;;  %v322_v30 = vmul.f32 %v315_v46, %v1448_v6  ;;  %v323_v33 = vmul.f32 %v315_v46, %v1450_v7  ;;  %s2042_s7 = sld [smem:[#allocation2 + $0x2b]] }
  0x58   :  { %v325_v31 = vmul.f32 %v324_v25, %v1452_v8  ;;  %v326_v27 = vmul.f32 %v324_v25, %v1454_v9  ;;  %v327_v32 = vmul.f32 %v324_v25, %v1456_v11  ;;  %v328_v22 = vmul.f32 %v324_v25, %v1458_v12  ;;  %s2044_s8 = sld [smem:[#allocation2 + $0x3b]] }
  0x59   :  { %v329_v61 = vmul.f32 %v324_v25, %v1460_v13  ;;  %v330_v39 = vmul.f32 %v324_v25, %v1465_v17  ;;  %v331_v41 = vmul.f32 %v324_v25, %v1467_v18  ;;  %v332_v63 = vmul.f32 %v324_v25, %v1469_v19 }
  0x5a   :  { %v333_v10 = vadd.f32 %v325_v31, %v316_v28  ;;  %v334_v42 = vadd.f32 %v326_v27, %v317_v48  ;;  %v335_v14 = vadd.f32 %v327_v32, %v318_v49  ;;  %v336_v15 = vadd.f32 %v328_v22, %v319_v29 }
  0x5b   :  { %v337_v43 = vadd.f32 %v329_v61, %v320_v50  ;;  %v338_v16 = vadd.f32 %v330_v39, %v321_v62  ;;  %v339_v44 = vadd.f32 %v331_v41, %v322_v30  ;;  %v340_v40 = vadd.f32 %v332_v63, %v323_v33 }
  0x5c   :  { %v342_v34 = vadd.f32 %v341_v26, %v333_v10  ;;  %v343_v51 = vadd.f32 %v341_v26, %v334_v42  ;;  %v344_v53 = vadd.f32 %v341_v26, %v335_v14  ;;  %v345_v36 = vadd.f32 %v341_v26, %v336_v15 }
  0x5d   :  { %v346_v37 = vadd.f32 %v341_v26, %v337_v43  ;;  %v347_v54 = vadd.f32 %v341_v26, %v338_v16  ;;  %v348_v38 = vadd.f32 %v341_v26, %v339_v44  ;;  %v349_v23 = vadd.f32 %v341_v26, %v340_v40 }
  0x5e   :  { %v350_v55 = vmax.f32 %v342_v34, 0.0  ;;  %v351_v60 = vmax.f32 %v343_v51, 0.0  ;;  %v352_v56 = vmax.f32 %v344_v53, 0.0  ;;  %v353_v52 = vmax.f32 %v345_v36, 0.0 }
  0x5f   :  { %v354_v46 = vmax.f32 %v346_v37, 0.0  ;;  %v355_v25 = vmax.f32 %v347_v54, 0.0  ;;  %v356_v28 = vmax.f32 %v348_v38, 0.0  ;;  %v357_v48 = vmax.f32 %v349_v23, 0.0 }
  0x60   :  { %v359_v49 = vmul.f32 %v358_v47, %v350_v55  ;;  %v360_v29 = vmul.f32 %v358_v47, %v351_v60  ;;  %v361_v50 = vmul.f32 %v358_v47, %v352_v56  ;;  %v362_v62 = vmul.f32 %v358_v47, %v353_v52 }
  0x61   :  { %v363_v30 = vmul.f32 %v358_v47, %v354_v46  ;;  %v364_v33 = vmul.f32 %v358_v47, %v355_v25  ;;  %v365_v31 = vmul.f32 %v358_v47, %v356_v28  ;;  %v366_v26 = vmul.f32 %v358_v47, %v357_v48 }
  0x62   :  { %v1693_v27 = vadd.f32 %v359_v49, %v1641_v57  ;;  %v1696_v32 = vadd.f32 %v360_v29, %v1644_v58  ;;  %v1699_v22 = vadd.f32 %v361_v50, %v1647_v59  ;;  %v1702_v61 = vadd.f32 %v362_v62, %v1650_v20 }
  0x63   :  { %v1705_v39 = vadd.f32 %v363_v30, %v1653_v21  ;;  %v1708_v41 = vadd.f32 %v364_v33, %v1656_v24  ;;  %v1711_v47 = vadd.f32 %v365_v31, %v1659_v35  ;;  %v1714_v57 = vadd.f32 %v366_v26, %v1662_v45 }
  0x64   :  { %v379_v58 = vstv %s1684_s9  ;;  %v388_v63 = vstv %s1686_s10  ;;  %v405_v10 = vstv %s1688_s11  ;;  %v422_v59 = vstv %s1690_s12  ;;  %s2090_s9 = sld [smem:[#allocation2 + $0xc]] }
  0x65   :  { %v380_v42 = vmul.f32 %v379_v58, %v1436_v0  ;;  %v381_v20 = vmul.f32 %v379_v58, %v1438_v1  ;;  %v382_v21 = vmul.f32 %v379_v58, %v1440_v2  ;;  %v383_v14 = vmul.f32 %v379_v58, %v1442_v3  ;;  %s2092_s10 = sld [smem:[#allocation2 + $0x1c]] }
  0x66   :  { %v384_v24 = vmul.f32 %v379_v58, %v1444_v4  ;;  %v385_v35 = vmul.f32 %v379_v58, %v1446_v5  ;;  %v386_v15 = vmul.f32 %v379_v58, %v1448_v6  ;;  %v387_v45 = vmul.f32 %v379_v58, %v1450_v7  ;;  %s2094_s11 = sld [smem:[#allocation2 + $0x2c]] }
  0x67   :  { %v389_v43 = vmul.f32 %v388_v63, %v1452_v8  ;;  %v390_v16 = vmul.f32 %v388_v63, %v1454_v9  ;;  %v391_v44 = vmul.f32 %v388_v63, %v1456_v11  ;;  %v392_v40 = vmul.f32 %v388_v63, %v1458_v12  ;;  %s2096_s12 = sld [smem:[#allocation2 + $0x3c]] }
  0x68   :  { %v393_v34 = vmul.f32 %v388_v63, %v1460_v13  ;;  %v394_v51 = vmul.f32 %v388_v63, %v1465_v17  ;;  %v395_v53 = vmul.f32 %v388_v63, %v1467_v18  ;;  %v396_v36 = vmul.f32 %v388_v63, %v1469_v19 }
  0x69   :  { %v397_v37 = vadd.f32 %v389_v43, %v380_v42  ;;  %v398_v54 = vadd.f32 %v390_v16, %v381_v20  ;;  %v399_v38 = vadd.f32 %v391_v44, %v382_v21  ;;  %v400_v23 = vadd.f32 %v392_v40, %v383_v14 }
  0x6a   :  { %v401_v55 = vadd.f32 %v393_v34, %v384_v24  ;;  %v402_v60 = vadd.f32 %v394_v51, %v385_v35  ;;  %v403_v56 = vadd.f32 %v395_v53, %v386_v15  ;;  %v404_v52 = vadd.f32 %v396_v36, %v387_v45 }
  0x6b   :  { %v406_v46 = vadd.f32 %v405_v10, %v397_v37  ;;  %v407_v25 = vadd.f32 %v405_v10, %v398_v54  ;;  %v408_v28 = vadd.f32 %v405_v10, %v399_v38  ;;  %v409_v48 = vadd.f32 %v405_v10, %v400_v23 }
  0x6c   :  { %v410_v49 = vadd.f32 %v405_v10, %v401_v55  ;;  %v411_v29 = vadd.f32 %v405_v10, %v402_v60  ;;  %v412_v50 = vadd.f32 %v405_v10, %v403_v56  ;;  %v413_v62 = vadd.f32 %v405_v10, %v404_v52 }
  0x6d   :  { %v414_v30 = vmax.f32 %v406_v46, 0.0  ;;  %v415_v33 = vmax.f32 %v407_v25, 0.0  ;;  %v416_v31 = vmax.f32 %v408_v28, 0.0  ;;  %v417_v26 = vmax.f32 %v409_v48, 0.0 }
  0x6e   :  { %v418_v58 = vmax.f32 %v410_v49, 0.0  ;;  %v419_v63 = vmax.f32 %v411_v29, 0.0  ;;  %v420_v42 = vmax.f32 %v412_v50, 0.0  ;;  %v421_v20 = vmax.f32 %v413_v62, 0.0 }
  0x6f   :  { %v423_v21 = vmul.f32 %v422_v59, %v414_v30  ;;  %v424_v14 = vmul.f32 %v422_v59, %v415_v33  ;;  %v425_v24 = vmul.f32 %v422_v59, %v416_v31  ;;  %v426_v35 = vmul.f32 %v422_v59, %v417_v26 }
  0x70   :  { %v427_v15 = vmul.f32 %v422_v59, %v418_v58  ;;  %v428_v45 = vmul.f32 %v422_v59, %v419_v63  ;;  %v429_v43 = vmul.f32 %v422_v59, %v420_v42  ;;  %v430_v10 = vmul.f32 %v422_v59, %v421_v20 }
  0x71   :  { %v1745_v16 = vadd.f32 %v423_v21, %v1693_v27  ;;  %v1748_v44 = vadd.f32 %v424_v14, %v1696_v32  ;;  %v1751_v40 = vadd.f32 %v425_v24, %v1699_v22  ;;  %v1754_v34 = vadd.f32 %v426_v35, %v1702_v61 }
  0x72   :  { %v1757_v51 = vadd.f32 %v427_v15, %v1705_v39  ;;  %v1760_v53 = vadd.f32 %v428_v45, %v1708_v41  ;;  %v1763_v59 = vadd.f32 %v429_v43, %v1711_v47  ;;  %v1766_v27 = vadd.f32 %v430_v10, %v1714_v57 }
  0x73   :  { %v443_v32 = vstv %s1736_s13  ;;  %v452_v36 = vstv %s1738_s14  ;;  %v469_v37 = vstv %s1740_s17  ;;  %v486_v22 = vstv %s1742_s18  ;;  %s2142_s13 = sld [smem:[#allocation2 + $0xd]] }
  0x74   :  { %v444_v54 = vmul.f32 %v443_v32, %v1436_v0  ;;  %v445_v61 = vmul.f32 %v443_v32, %v1438_v1  ;;  %v446_v39 = vmul.f32 %v443_v32, %v1440_v2  ;;  %v447_v38 = vmul.f32 %v443_v32, %v1442_v3  ;;  %s2144_s14 = sld [smem:[#allocation2 + $0x1d]] }
  0x75   :  { %v448_v41 = vmul.f32 %v443_v32, %v1444_v4  ;;  %v449_v47 = vmul.f32 %v443_v32, %v1446_v5  ;;  %v450_v23 = vmul.f32 %v443_v32, %v1448_v6  ;;  %v451_v57 = vmul.f32 %v443_v32, %v1450_v7  ;;  %s2146_s17 = sld [smem:[#allocation2 + $0x2d]] }
  0x76   :  { %v453_v55 = vmul.f32 %v452_v36, %v1452_v8  ;;  %v454_v60 = vmul.f32 %v452_v36, %v1454_v9  ;;  %v455_v56 = vmul.f32 %v452_v36, %v1456_v11  ;;  %v456_v52 = vmul.f32 %v452_v36, %v1458_v12  ;;  %s2148_s18 = sld [smem:[#allocation2 + $0x3d]] }
  0x77   :  { %v457_v46 = vmul.f32 %v452_v36, %v1460_v13  ;;  %v458_v25 = vmul.f32 %v452_v36, %v1465_v17  ;;  %v459_v28 = vmul.f32 %v452_v36, %v1467_v18  ;;  %v460_v48 = vmul.f32 %v452_v36, %v1469_v19 }
  0x78   :  { %v461_v49 = vadd.f32 %v453_v55, %v444_v54  ;;  %v462_v29 = vadd.f32 %v454_v60, %v445_v61  ;;  %v463_v50 = vadd.f32 %v455_v56, %v446_v39  ;;  %v464_v62 = vadd.f32 %v456_v52, %v447_v38 }
  0x79   :  { %v465_v30 = vadd.f32 %v457_v46, %v448_v41  ;;  %v466_v33 = vadd.f32 %v458_v25, %v449_v47  ;;  %v467_v31 = vadd.f32 %v459_v28, %v450_v23  ;;  %v468_v26 = vadd.f32 %v460_v48, %v451_v57 }
  0x7a   :  { %v470_v58 = vadd.f32 %v469_v37, %v461_v49  ;;  %v471_v63 = vadd.f32 %v469_v37, %v462_v29  ;;  %v472_v42 = vadd.f32 %v469_v37, %v463_v50  ;;  %v473_v20 = vadd.f32 %v469_v37, %v464_v62 }
  0x7b   :  { %v474_v21 = vadd.f32 %v469_v37, %v465_v30  ;;  %v475_v14 = vadd.f32 %v469_v37, %v466_v33  ;;  %v476_v24 = vadd.f32 %v469_v37, %v467_v31  ;;  %v477_v35 = vadd.f32 %v469_v37, %v468_v26 }
  0x7c   :  { %v478_v15 = vmax.f32 %v470_v58, 0.0  ;;  %v479_v45 = vmax.f32 %v471_v63, 0.0  ;;  %v480_v43 = vmax.f32 %v472_v42, 0.0  ;;  %v481_v10 = vmax.f32 %v473_v20, 0.0 }
  0x7d   :  { %v482_v32 = vmax.f32 %v474_v21, 0.0  ;;  %v483_v36 = vmax.f32 %v475_v14, 0.0  ;;  %v484_v54 = vmax.f32 %v476_v24, 0.0  ;;  %v485_v61 = vmax.f32 %v477_v35, 0.0 }
  0x7e   :  { %v487_v39 = vmul.f32 %v486_v22, %v478_v15  ;;  %v488_v38 = vmul.f32 %v486_v22, %v479_v45  ;;  %v489_v41 = vmul.f32 %v486_v22, %v480_v43  ;;  %v490_v47 = vmul.f32 %v486_v22, %v481_v10 }
  0x7f   :  { %v491_v23 = vmul.f32 %v486_v22, %v482_v32  ;;  %v492_v57 = vmul.f32 %v486_v22, %v483_v36  ;;  %v493_v55 = vmul.f32 %v486_v22, %v484_v54  ;;  %v494_v37 = vmul.f32 %v486_v22, %v485_v61 }
  0x80   :  { %v1797_v60 = vadd.f32 %v487_v39, %v1745_v16  ;;  %v1800_v56 = vadd.f32 %v488_v38, %v1748_v44  ;;  %v1803_v52 = vadd.f32 %v489_v41, %v1751_v40  ;;  %v1806_v46 = vadd.f32 %v490_v47, %v1754_v34 }
  0x81   :  { %v1809_v25 = vadd.f32 %v491_v23, %v1757_v51  ;;  %v1812_v28 = vadd.f32 %v492_v57, %v1760_v53  ;;  %v1815_v22 = vadd.f32 %v493_v55, %v1763_v59  ;;  %v1818_v16 = vadd.f32 %v494_v37, %v1766_v27 }
  0x82   :  { %v507_v44 = vstv %s1788_s0  ;;  %v516_v48 = vstv %s1790_s19  ;;  %v533_v49 = vstv %s1792_s20  ;;  %v550_v40 = vstv %s1794_s21  ;;  %s2194_s0 = sld [smem:[#allocation2 + $0xe]] }
  0x83   :  { %v508_v29 = vmul.f32 %v507_v44, %v1436_v0  ;;  %v509_v34 = vmul.f32 %v507_v44, %v1438_v1  ;;  %v510_v51 = vmul.f32 %v507_v44, %v1440_v2  ;;  %v511_v50 = vmul.f32 %v507_v44, %v1442_v3  ;;  %s2196_s19 = sld [smem:[#allocation2 + $0x1e]] }
  0x84   :  { %v512_v53 = vmul.f32 %v507_v44, %v1444_v4  ;;  %v513_v59 = vmul.f32 %v507_v44, %v1446_v5  ;;  %v514_v62 = vmul.f32 %v507_v44, %v1448_v6  ;;  %v515_v27 = vmul.f32 %v507_v44, %v1450_v7  ;;  %s2198_s20 = sld [smem:[#allocation2 + $0x2e]] }
  0x85   :  { %v517_v30 = vmul.f32 %v516_v48, %v1452_v8  ;;  %v518_v33 = vmul.f32 %v516_v48, %v1454_v9  ;;  %v519_v0 = vmul.f32 %v516_v48, %v1456_v11  ;;  %v520_v1 = vmul.f32 %v516_v48, %v1458_v12  ;;  %s2200_s21 = sld [smem:[#allocation2 + $0x3e]] }
  0x86   :  { %v521_v2 = vmul.f32 %v516_v48, %v1460_v13  ;;  %v522_v3 = vmul.f32 %v516_v48, %v1465_v17  ;;  %v523_v4 = vmul.f32 %v516_v48, %v1467_v18  ;;  %v524_v5 = vmul.f32 %v516_v48, %v1469_v19 }
  0x87   :  { %v525_v6 = vadd.f32 %v517_v30, %v508_v29  ;;  %v526_v7 = vadd.f32 %v518_v33, %v509_v34  ;;  %v527_v31 = vadd.f32 %v519_v0, %v510_v51  ;;  %v528_v8 = vadd.f32 %v520_v1, %v511_v50  ;;  %v1878_v34 = vld [vmem:[#allocation6] sm:$0xff]  ;;  %v1884_v51 = vld [vmem:[#allocation6 + $0x10] sm:$0xff]  ;;  %v1887_v50 = vld [vmem:[#allocation6 + $0x18] sm:$0xff] }
  0x88   :  { %v529_v9 = vadd.f32 %v521_v2, %v512_v53  ;;  %v530_v11 = vadd.f32 %v522_v3, %v513_v59  ;;  %v531_v26 = vadd.f32 %v523_v4, %v514_v62  ;;  %v532_v12 = vadd.f32 %v524_v5, %v515_v27  ;;  %v1890_v53 = vld [vmem:[#allocation6 + $0x20] sm:$0xff]  ;;  %v1893_v62 = vld [vmem:[#allocation6 + $0x28] sm:$0xff]  ;;  %v1896_v30 = vld [vmem:[#allocation6 + $0x30] sm:$0xff] }
  0x89   :  { %v534_v13 = vadd.f32 %v533_v49, %v525_v6  ;;  %v535_v17 = vadd.f32 %v533_v49, %v526_v7  ;;  %v536_v58 = vadd.f32 %v533_v49, %v527_v31  ;;  %v537_v18 = vadd.f32 %v533_v49, %v528_v8  ;;  %v1899_v0 = vld [vmem:[#allocation6 + $0x38] sm:$0xff]  ;;  %v1902_v2 = vld [vmem:[#allocation6 + $0x40] sm:$0xff]  ;;  %v1905_v4 = vld [vmem:[#allocation6 + $0x48] sm:$0xff] }
  0x8a   :  { %v538_v19 = vadd.f32 %v533_v49, %v529_v9  ;;  %v539_v63 = vadd.f32 %v533_v49, %v530_v11  ;;  %v540_v42 = vadd.f32 %v533_v49, %v531_v26  ;;  %v541_v20 = vadd.f32 %v533_v49, %v532_v12  ;;  %v1908_v6 = vld [vmem:[#allocation6 + $0x50] sm:$0xff]  ;;  %v1911_v31 = vld [vmem:[#allocation6 + $0x58] sm:$0xff]  ;;  %v1914_v9 = vld [vmem:[#allocation6 + $0x60] sm:$0xff] }
  0x8b   :  { %v542_v21 = vmax.f32 %v534_v13, 0.0  ;;  %v543_v14 = vmax.f32 %v535_v17, 0.0  ;;  %v544_v24 = vmax.f32 %v536_v58, 0.0  ;;  %v545_v35 = vmax.f32 %v537_v18, 0.0  ;;  %v1917_v26 = vld [vmem:[#allocation6 + $0x68] sm:$0xff]  ;;  %v1920_v13 = vld [vmem:[#allocation6 + $0x70] sm:$0xff] }
  0x8c   :  { %v546_v15 = vmax.f32 %v538_v19, 0.0  ;;  %v547_v45 = vmax.f32 %v539_v63, 0.0  ;;  %v548_v43 = vmax.f32 %v540_v42, 0.0  ;;  %v549_v10 = vmax.f32 %v541_v20, 0.0  ;;  %v1923_v58 = vld [vmem:[#allocation6 + $0x78] sm:$0xff] }
  0x8d   :  { %v551_v32 = vmul.f32 %v550_v40, %v542_v21  ;;  %v552_v36 = vmul.f32 %v550_v40, %v543_v14  ;;  %v553_v54 = vmul.f32 %v550_v40, %v544_v24  ;;  %v554_v61 = vmul.f32 %v550_v40, %v545_v35 }
  0x8e   :  { %v555_v39 = vmul.f32 %v550_v40, %v546_v15  ;;  %v556_v38 = vmul.f32 %v550_v40, %v547_v45  ;;  %v557_v41 = vmul.f32 %v550_v40, %v548_v43  ;;  %v558_v47 = vmul.f32 %v550_v40, %v549_v10 }
  0x8f   :  { %v1849_v23 = vadd.f32 %v551_v32, %v1797_v60  ;;  %v1852_v57 = vadd.f32 %v552_v36, %v1800_v56  ;;  %v1855_v55 = vadd.f32 %v553_v54, %v1803_v52  ;;  %v1858_v37 = vadd.f32 %v554_v61, %v1806_v46 }
  0x90   :  { %v1861_v44 = vadd.f32 %v555_v39, %v1809_v25  ;;  %v1864_v48 = vadd.f32 %v556_v38, %v1812_v28  ;;  %v1867_v49 = vadd.f32 %v557_v41, %v1815_v22  ;;  %v1870_v60 = vadd.f32 %v558_v47, %v1818_v16  ;;  %v1881_v25 = vld [vmem:[#allocation6 + $0x8] sm:$0xff] }
  0x91   :  { %v571_v56 = vstv %s1840_s1  ;;  %v580_v40 = vstv %s1842_s22  ;;  %v597_v29 = vstv %s1844_s23  ;;  %v1876_v52 = vstv %s1846_s24  ;;  %s2246_s1 = sld [smem:[#allocation2 + $0xf]] }
  0x92   :  { %v572_v46 = vmul.f32 %v1878_v34, %v571_v56  ;;  %v573_v28 = vmul.f32 %v1881_v25, %v571_v56  ;;  %v574_v22 = vmul.f32 %v1884_v51, %v571_v56  ;;  %v575_v16 = vmul.f32 %v1887_v50, %v571_v56  ;;  %s2248_s22 = sld [smem:[#allocation2 + $0x1f]] }
  0x93   :  { %v576_v59 = vmul.f32 %v1890_v53, %v571_v56  ;;  %v577_v27 = vmul.f32 %v1893_v62, %v571_v56  ;;  %v578_v33 = vmul.f32 %v1896_v30, %v571_v56  ;;  %v579_v1 = vmul.f32 %v1899_v0, %v571_v56  ;;  %s2250_s23 = sld [smem:[#allocation2 + $0x2f]] }
  0x94   :  { %v581_v3 = vmul.f32 %v1902_v2, %v580_v40  ;;  %v582_v5 = vmul.f32 %v1905_v4, %v580_v40  ;;  %v583_v7 = vmul.f32 %v1908_v6, %v580_v40  ;;  %v584_v8 = vmul.f32 %v1911_v31, %v580_v40  ;;  %s2252_s24 = sld [smem:[#allocation2 + $0x3f]] }
  0x95   :  { %v585_v11 = vmul.f32 %v1914_v9, %v580_v40  ;;  %v586_v12 = vmul.f32 %v1917_v26, %v580_v40  ;;  %v587_v17 = vmul.f32 %v1920_v13, %v580_v40  ;;  %v588_v18 = vmul.f32 %v1923_v58, %v580_v40 }
  0x96   :  { %v589_v19 = vadd.f32 %v581_v3, %v572_v46  ;;  %v590_v63 = vadd.f32 %v582_v5, %v573_v28  ;;  %v591_v42 = vadd.f32 %v583_v7, %v574_v22  ;;  %v592_v20 = vadd.f32 %v584_v8, %v575_v16 }
  0x97   :  { %v593_v21 = vadd.f32 %v585_v11, %v576_v59  ;;  %v594_v14 = vadd.f32 %v586_v12, %v577_v27  ;;  %v595_v24 = vadd.f32 %v587_v17, %v578_v33  ;;  %v596_v35 = vadd.f32 %v588_v18, %v579_v1 }
  0x98   :  { %v598_v15 = vadd.f32 %v597_v29, %v589_v19  ;;  %v599_v45 = vadd.f32 %v597_v29, %v590_v63  ;;  %v600_v43 = vadd.f32 %v597_v29, %v591_v42  ;;  %v601_v10 = vadd.f32 %v597_v29, %v592_v20 }
  0x99   :  { %v602_v32 = vadd.f32 %v597_v29, %v593_v21  ;;  %v603_v36 = vadd.f32 %v597_v29, %v594_v14  ;;  %v604_v54 = vadd.f32 %v597_v29, %v595_v24  ;;  %v605_v61 = vadd.f32 %v597_v29, %v596_v35 }
  0x9a   :  { %v606_v39 = vmax.f32 %v598_v15, 0.0  ;;  %v607_v38 = vmax.f32 %v599_v45, 0.0  ;;  %v608_v41 = vmax.f32 %v600_v43, 0.0  ;;  %v609_v47 = vmax.f32 %v601_v10, 0.0 }
  0x9b   :  { %v610_v56 = vmax.f32 %v602_v32, 0.0  ;;  %v611_v40 = vmax.f32 %v603_v36, 0.0  ;;  %v612_v46 = vmax.f32 %v604_v54, 0.0  ;;  %v613_v28 = vmax.f32 %v605_v61, 0.0 }
  0x9c   :  { %v615_v22 = vmul.f32 %v1876_v52, %v606_v39  ;;  %v616_v16 = vmul.f32 %v1876_v52, %v607_v38  ;;  %v617_v59 = vmul.f32 %v1876_v52, %v608_v41  ;;  %v618_v27 = vmul.f32 %v1876_v52, %v609_v47 }
  0x9d   :  { %v619_v29 = vmul.f32 %v1876_v52, %v610_v56  ;;  %v620_v33 = vmul.f32 %v1876_v52, %v611_v40  ;;  %v621_v1 = vmul.f32 %v1876_v52, %v612_v46  ;;  %v622_v3 = vmul.f32 %v1876_v52, %v613_v28 }
  0x9e   :  { %v1943_v5 = vadd.f32 %v615_v22, %v1849_v23  ;;  %v1946_v7 = vadd.f32 %v616_v16, %v1852_v57  ;;  %v1949_v8 = vadd.f32 %v617_v59, %v1855_v55  ;;  %v1952_v11 = vadd.f32 %v618_v27, %v1858_v37 }
  0x9f   :  { %v1955_v12 = vadd.f32 %v619_v29, %v1861_v44  ;;  %v1958_v17 = vadd.f32 %v620_v33, %v1864_v48  ;;  %v1961_v52 = vadd.f32 %v621_v1, %v1867_v49  ;;  %v1964_v23 = vadd.f32 %v622_v3, %v1870_v60 }
  0xa0   :  { %v635_v57 = vstv %s1926_s25  ;;  %v644_v18 = vstv %s1928_s26  ;;  %v661_v19 = vstv %s1930_s27  ;;  %v678_v55 = vstv %s1932_s28  ;;  %s1299_s25 = sld [smem:[#allocation2 + $0x40]]  ;;  %s1411_s26 = smov [#allocation7]  }
  0xa1   :  { %v636_v63 = vmul.f32 %v1878_v34, %v635_v57  ;;  %v637_v37 = vmul.f32 %v1881_v25, %v635_v57  ;;  %v638_v44 = vmul.f32 %v1884_v51, %v635_v57  ;;  %v639_v42 = vmul.f32 %v1887_v50, %v635_v57  ;;  %s1222_s27 = sshll.u32 %s1411_s26, 4  ;;  %s1223_s27 = int_to_ptr.vmem [resolvable:$true] %s1222_s27 }
  0xa2   :  { %v640_v48 = vmul.f32 %v1890_v53, %v635_v57  ;;  %v641_v49 = vmul.f32 %v1893_v62, %v635_v57  ;;  %v642_v20 = vmul.f32 %v1896_v30, %v635_v57  ;;  %v643_v60 = vmul.f32 %v1899_v0, %v635_v57  ;;  %s1381_s28 = scalar_lea.vmem %s1223_s27, 1024  ;;  %p1386_p6 = scmp.lt.s32.totalorder %s1223_s27, %s1223_s27 }
  0xa3   :  { %v645_v21 = vmul.f32 %v1902_v2, %v644_v18  ;;  %v646_v14 = vmul.f32 %v1905_v4, %v644_v18  ;;  %v647_v24 = vmul.f32 %v1908_v6, %v644_v18  ;;  %v648_v35 = vmul.f32 %v1911_v31, %v644_v18  ;;  %p1382_p5 = scmp.ne.s32.totalorder %s1223_s27, %s1381_s28  ;;  %p1387_p7 = scmp.lt.s32.totalorder %s1381_s28, %s1381_s28 }
  0xa4   :  { %v649_v15 = vmul.f32 %v1914_v9, %v644_v18  ;;  %v650_v45 = vmul.f32 %v1917_v26, %v644_v18  ;;  %v651_v43 = vmul.f32 %v1920_v13, %v644_v18  ;;  %v652_v10 = vmul.f32 %v1923_v58, %v644_v18 }
  0xa5   :  { %v653_v32 = vadd.f32 %v645_v21, %v636_v63  ;;  %v654_v36 = vadd.f32 %v646_v14, %v637_v37  ;;  %v655_v54 = vadd.f32 %v647_v24, %v638_v44  ;;  %v656_v61 = vadd.f32 %v648_v35, %v639_v42  ;;  %p1388_p8 = por %p1387_p7, %p1386_p6 }
  0xa6   :  { %v657_v39 = vadd.f32 %v649_v15, %v640_v48  ;;  %v658_v38 = vadd.f32 %v650_v45, %v641_v49  ;;  %v659_v41 = vadd.f32 %v651_v43, %v642_v20  ;;  %v660_v47 = vadd.f32 %v652_v10, %v643_v60 }
  0xa7   :  { %v662_v56 = vadd.f32 %v661_v19, %v653_v32  ;;  %v663_v40 = vadd.f32 %v661_v19, %v654_v36  ;;  %v664_v46 = vadd.f32 %v661_v19, %v655_v54  ;;  %v665_v28 = vadd.f32 %v661_v19, %v656_v61  ;;  %p1389_p9 = pnand %p1388_p8, %p1382_p5 }
  0xa8   :  { %v666_v22 = vadd.f32 %v661_v19, %v657_v39  ;;  %v667_v16 = vadd.f32 %v661_v19, %v658_v38  ;;  %v668_v59 = vadd.f32 %v661_v19, %v659_v41  ;;  %v669_v27 = vadd.f32 %v661_v19, %v660_v47 }
  0xa9   :  { %v670_v29 = vmax.f32 %v662_v56, 0.0  ;;  %v671_v33 = vmax.f32 %v663_v40, 0.0  ;;  %v672_v1 = vmax.f32 %v664_v46, 0.0  ;;  %v673_v3 = vmax.f32 %v665_v28, 0.0 }
  0xaa   :  { %v674_v57 = vmax.f32 %v666_v22, 0.0  ;;  %v675_v18 = vmax.f32 %v667_v16, 0.0  ;;  %v676_v63 = vmax.f32 %v668_v59, 0.0  ;;  %v677_v37 = vmax.f32 %v669_v27, 0.0 }
  0xab   :  { %v679_v44 = vmul.f32 %v678_v55, %v670_v29  ;;  %v680_v42 = vmul.f32 %v678_v55, %v671_v33  ;;  %v681_v48 = vmul.f32 %v678_v55, %v672_v1  ;;  %v682_v49 = vmul.f32 %v678_v55, %v673_v3 }
  0xac   :  { %v683_v20 = vmul.f32 %v678_v55, %v674_v57  ;;  %v684_v60 = vmul.f32 %v678_v55, %v675_v18  ;;  %v685_v21 = vmul.f32 %v678_v55, %v676_v63  ;;  %v686_v19 = vmul.f32 %v678_v55, %v677_v37 }
  0xad   :  { %v1995_v14 = vadd.f32 %v679_v44, %v1943_v5  ;;  %v1998_v24 = vadd.f32 %v680_v42, %v1946_v7  ;;  %v2001_v35 = vadd.f32 %v681_v48, %v1949_v8  ;;  %v2004_v15 = vadd.f32 %v682_v49, %v1952_v11 }
  0xae   :  { %v2007_v45 = vadd.f32 %v683_v20, %v1955_v12  ;;  %v2010_v43 = vadd.f32 %v684_v60, %v1958_v17  ;;  %v2013_v55 = vadd.f32 %v685_v21, %v1961_v52  ;;  %v2016_v5 = vadd.f32 %v686_v19, %v1964_v23 }
  0xaf   :  { %v699_v7 = vstv %s1986_s29  ;;  %v708_v10 = vstv %s1988_s30  ;;  %v725_v32 = vstv %s1990_s3  ;;  %v742_v8 = vstv %s1992_s4 }
  0xb0   :  { %v700_v36 = vmul.f32 %v1878_v34, %v699_v7  ;;  %v701_v11 = vmul.f32 %v1881_v25, %v699_v7  ;;  %v702_v12 = vmul.f32 %v1884_v51, %v699_v7  ;;  %v703_v54 = vmul.f32 %v1887_v50, %v699_v7 }
  0xb1   :  { %v704_v17 = vmul.f32 %v1890_v53, %v699_v7  ;;  %v705_v52 = vmul.f32 %v1893_v62, %v699_v7  ;;  %v706_v61 = vmul.f32 %v1896_v30, %v699_v7  ;;  %v707_v23 = vmul.f32 %v1899_v0, %v699_v7 }
  0xb2   :  { %v709_v39 = vmul.f32 %v1902_v2, %v708_v10  ;;  %v710_v38 = vmul.f32 %v1905_v4, %v708_v10  ;;  %v711_v41 = vmul.f32 %v1908_v6, %v708_v10  ;;  %v712_v47 = vmul.f32 %v1911_v31, %v708_v10 }
  0xb3   :  { %v713_v56 = vmul.f32 %v1914_v9, %v708_v10  ;;  %v714_v40 = vmul.f32 %v1917_v26, %v708_v10  ;;  %v715_v46 = vmul.f32 %v1920_v13, %v708_v10  ;;  %v716_v28 = vmul.f32 %v1923_v58, %v708_v10 }
  0xb4   :  { %v717_v22 = vadd.f32 %v709_v39, %v700_v36  ;;  %v718_v16 = vadd.f32 %v710_v38, %v701_v11  ;;  %v719_v59 = vadd.f32 %v711_v41, %v702_v12  ;;  %v720_v27 = vadd.f32 %v712_v47, %v703_v54 }
  0xb5   :  { %v721_v29 = vadd.f32 %v713_v56, %v704_v17  ;;  %v722_v33 = vadd.f32 %v714_v40, %v705_v52  ;;  %v723_v1 = vadd.f32 %v715_v46, %v706_v61  ;;  %v724_v3 = vadd.f32 %v716_v28, %v707_v23 }
  0xb6   :  { %v726_v57 = vadd.f32 %v725_v32, %v717_v22  ;;  %v727_v18 = vadd.f32 %v725_v32, %v718_v16  ;;  %v728_v63 = vadd.f32 %v725_v32, %v719_v59  ;;  %v729_v37 = vadd.f32 %v725_v32, %v720_v27 }
  0xb7   :  { %v730_v44 = vadd.f32 %v725_v32, %v721_v29  ;;  %v731_v42 = vadd.f32 %v725_v32, %v722_v33  ;;  %v732_v48 = vadd.f32 %v725_v32, %v723_v1  ;;  %v733_v49 = vadd.f32 %v725_v32, %v724_v3 }
  0xb8   :  { %v734_v20 = vmax.f32 %v726_v57, 0.0  ;;  %v735_v60 = vmax.f32 %v727_v18, 0.0  ;;  %v736_v21 = vmax.f32 %v728_v63, 0.0  ;;  %v737_v19 = vmax.f32 %v729_v37, 0.0 }
  0xb9   :  { %v738_v7 = vmax.f32 %v730_v44, 0.0  ;;  %v739_v10 = vmax.f32 %v731_v42, 0.0  ;;  %v740_v36 = vmax.f32 %v732_v48, 0.0  ;;  %v741_v11 = vmax.f32 %v733_v49, 0.0 }
  0xba   :  { %v743_v12 = vmul.f32 %v742_v8, %v734_v20  ;;  %v744_v54 = vmul.f32 %v742_v8, %v735_v60  ;;  %v745_v17 = vmul.f32 %v742_v8, %v736_v21  ;;  %v746_v52 = vmul.f32 %v742_v8, %v737_v19 }
  0xbb   :  { %v747_v61 = vmul.f32 %v742_v8, %v738_v7  ;;  %v748_v23 = vmul.f32 %v742_v8, %v739_v10  ;;  %v749_v39 = vmul.f32 %v742_v8, %v740_v36  ;;  %v750_v32 = vmul.f32 %v742_v8, %v741_v11 }
  0xbc   :  { %v2047_v38 = vadd.f32 %v743_v12, %v1995_v14  ;;  %v2050_v41 = vadd.f32 %v744_v54, %v1998_v24  ;;  %v2053_v47 = vadd.f32 %v745_v17, %v2001_v35  ;;  %v2056_v56 = vadd.f32 %v746_v52, %v2004_v15 }
  0xbd   :  { %v2059_v40 = vadd.f32 %v747_v61, %v2007_v45  ;;  %v2062_v46 = vadd.f32 %v748_v23, %v2010_v43  ;;  %v2065_v8 = vadd.f32 %v749_v39, %v2013_v55  ;;  %v2068_v14 = vadd.f32 %v750_v32, %v2016_v5 }
  0xbe   :  { %v763_v24 = vstv %s2038_s5  ;;  %v772_v28 = vstv %s2040_s6  ;;  %v789_v22 = vstv %s2042_s7  ;;  %v806_v35 = vstv %s2044_s8 }
  0xbf   :  { %v764_v16 = vmul.f32 %v1878_v34, %v763_v24  ;;  %v765_v15 = vmul.f32 %v1881_v25, %v763_v24  ;;  %v766_v45 = vmul.f32 %v1884_v51, %v763_v24  ;;  %v767_v59 = vmul.f32 %v1887_v50, %v763_v24 }
  0xc0   :  { %v768_v43 = vmul.f32 %v1890_v53, %v763_v24  ;;  %v769_v55 = vmul.f32 %v1893_v62, %v763_v24  ;;  %v770_v27 = vmul.f32 %v1896_v30, %v763_v24  ;;  %v771_v5 = vmul.f32 %v1899_v0, %v763_v24 }
  0xc1   :  { %v773_v29 = vmul.f32 %v1902_v2, %v772_v28  ;;  %v774_v33 = vmul.f32 %v1905_v4, %v772_v28  ;;  %v775_v1 = vmul.f32 %v1908_v6, %v772_v28  ;;  %v776_v3 = vmul.f32 %v1911_v31, %v772_v28 }
  0xc2   :  { %v777_v57 = vmul.f32 %v1914_v9, %v772_v28  ;;  %v778_v18 = vmul.f32 %v1917_v26, %v772_v28  ;;  %v779_v63 = vmul.f32 %v1920_v13, %v772_v28  ;;  %v780_v37 = vmul.f32 %v1923_v58, %v772_v28 }
  0xc3   :  { %v781_v44 = vadd.f32 %v773_v29, %v764_v16  ;;  %v782_v42 = vadd.f32 %v774_v33, %v765_v15  ;;  %v783_v48 = vadd.f32 %v775_v1, %v766_v45  ;;  %v784_v49 = vadd.f32 %v776_v3, %v767_v59 }
  0xc4   :  { %v785_v20 = vadd.f32 %v777_v57, %v768_v43  ;;  %v786_v60 = vadd.f32 %v778_v18, %v769_v55  ;;  %v787_v21 = vadd.f32 %v779_v63, %v770_v27  ;;  %v788_v19 = vadd.f32 %v780_v37, %v771_v5 }
  0xc5   :  { %v790_v7 = vadd.f32 %v789_v22, %v781_v44  ;;  %v791_v10 = vadd.f32 %v789_v22, %v782_v42  ;;  %v792_v36 = vadd.f32 %v789_v22, %v783_v48  ;;  %v793_v11 = vadd.f32 %v789_v22, %v784_v49 }
  0xc6   :  { %v794_v12 = vadd.f32 %v789_v22, %v785_v20  ;;  %v795_v54 = vadd.f32 %v789_v22, %v786_v60  ;;  %v796_v17 = vadd.f32 %v789_v22, %v787_v21  ;;  %v797_v52 = vadd.f32 %v789_v22, %v788_v19 }
  0xc7   :  { %v798_v61 = vmax.f32 %v790_v7, 0.0  ;;  %v799_v23 = vmax.f32 %v791_v10, 0.0  ;;  %v800_v39 = vmax.f32 %v792_v36, 0.0  ;;  %v801_v32 = vmax.f32 %v793_v11, 0.0 }
  0xc8   :  { %v802_v24 = vmax.f32 %v794_v12, 0.0  ;;  %v803_v28 = vmax.f32 %v795_v54, 0.0  ;;  %v804_v16 = vmax.f32 %v796_v17, 0.0  ;;  %v805_v15 = vmax.f32 %v797_v52, 0.0 }
  0xc9   :  { %v807_v45 = vmul.f32 %v806_v35, %v798_v61  ;;  %v808_v59 = vmul.f32 %v806_v35, %v799_v23  ;;  %v809_v43 = vmul.f32 %v806_v35, %v800_v39  ;;  %v810_v55 = vmul.f32 %v806_v35, %v801_v32 }
  0xca   :  { %v811_v27 = vmul.f32 %v806_v35, %v802_v24  ;;  %v812_v5 = vmul.f32 %v806_v35, %v803_v28  ;;  %v813_v29 = vmul.f32 %v806_v35, %v804_v16  ;;  %v814_v22 = vmul.f32 %v806_v35, %v805_v15 }
  0xcb   :  { %v2099_v33 = vadd.f32 %v807_v45, %v2047_v38  ;;  %v2102_v1 = vadd.f32 %v808_v59, %v2050_v41  ;;  %v2105_v3 = vadd.f32 %v809_v43, %v2053_v47  ;;  %v2108_v57 = vadd.f32 %v810_v55, %v2056_v56 }
  0xcc   :  { %v2111_v18 = vadd.f32 %v811_v27, %v2059_v40  ;;  %v2114_v63 = vadd.f32 %v812_v5, %v2062_v46  ;;  %v2117_v35 = vadd.f32 %v813_v29, %v2065_v8  ;;  %v2120_v38 = vadd.f32 %v814_v22, %v2068_v14 }
  0xcd   :  { %v827_v41 = vstv %s2090_s9  ;;  %v836_v37 = vstv %s2092_s10  ;;  %v853_v44 = vstv %s2094_s11  ;;  %v870_v47 = vstv %s2096_s12 }
  0xce   :  { %v828_v42 = vmul.f32 %v1878_v34, %v827_v41  ;;  %v829_v56 = vmul.f32 %v1881_v25, %v827_v41  ;;  %v830_v40 = vmul.f32 %v1884_v51, %v827_v41  ;;  %v831_v48 = vmul.f32 %v1887_v50, %v827_v41 }
  0xcf   :  { %v832_v46 = vmul.f32 %v1890_v53, %v827_v41  ;;  %v833_v8 = vmul.f32 %v1893_v62, %v827_v41  ;;  %v834_v49 = vmul.f32 %v1896_v30, %v827_v41  ;;  %v835_v14 = vmul.f32 %v1899_v0, %v827_v41 }
  0xd0   :  { %v837_v20 = vmul.f32 %v1902_v2, %v836_v37  ;;  %v838_v60 = vmul.f32 %v1905_v4, %v836_v37  ;;  %v839_v21 = vmul.f32 %v1908_v6, %v836_v37  ;;  %v840_v19 = vmul.f32 %v1911_v31, %v836_v37 }
  0xd1   :  { %v841_v7 = vmul.f32 %v1914_v9, %v836_v37  ;;  %v842_v10 = vmul.f32 %v1917_v26, %v836_v37  ;;  %v843_v36 = vmul.f32 %v1920_v13, %v836_v37  ;;  %v844_v11 = vmul.f32 %v1923_v58, %v836_v37 }
  0xd2   :  { %v845_v12 = vadd.f32 %v837_v20, %v828_v42  ;;  %v846_v54 = vadd.f32 %v838_v60, %v829_v56  ;;  %v847_v17 = vadd.f32 %v839_v21, %v830_v40  ;;  %v848_v52 = vadd.f32 %v840_v19, %v831_v48 }
  0xd3   :  { %v849_v61 = vadd.f32 %v841_v7, %v832_v46  ;;  %v850_v23 = vadd.f32 %v842_v10, %v833_v8  ;;  %v851_v39 = vadd.f32 %v843_v36, %v834_v49  ;;  %v852_v32 = vadd.f32 %v844_v11, %v835_v14 }
  0xd4   :  { %v854_v24 = vadd.f32 %v853_v44, %v845_v12  ;;  %v855_v28 = vadd.f32 %v853_v44, %v846_v54  ;;  %v856_v16 = vadd.f32 %v853_v44, %v847_v17  ;;  %v857_v15 = vadd.f32 %v853_v44, %v848_v52 }
  0xd5   :  { %v858_v45 = vadd.f32 %v853_v44, %v849_v61  ;;  %v859_v59 = vadd.f32 %v853_v44, %v850_v23  ;;  %v860_v43 = vadd.f32 %v853_v44, %v851_v39  ;;  %v861_v55 = vadd.f32 %v853_v44, %v852_v32 }
  0xd6   :  { %v862_v27 = vmax.f32 %v854_v24, 0.0  ;;  %v863_v5 = vmax.f32 %v855_v28, 0.0  ;;  %v864_v29 = vmax.f32 %v856_v16, 0.0  ;;  %v865_v22 = vmax.f32 %v857_v15, 0.0 }
  0xd7   :  { %v866_v41 = vmax.f32 %v858_v45, 0.0  ;;  %v867_v37 = vmax.f32 %v859_v59, 0.0  ;;  %v868_v42 = vmax.f32 %v860_v43, 0.0  ;;  %v869_v56 = vmax.f32 %v861_v55, 0.0 }
  0xd8   :  { %v871_v40 = vmul.f32 %v870_v47, %v862_v27  ;;  %v872_v48 = vmul.f32 %v870_v47, %v863_v5  ;;  %v873_v46 = vmul.f32 %v870_v47, %v864_v29  ;;  %v874_v8 = vmul.f32 %v870_v47, %v865_v22 }
  0xd9   :  { %v875_v49 = vmul.f32 %v870_v47, %v866_v41  ;;  %v876_v14 = vmul.f32 %v870_v47, %v867_v37  ;;  %v877_v20 = vmul.f32 %v870_v47, %v868_v42  ;;  %v878_v44 = vmul.f32 %v870_v47, %v869_v56 }
  0xda   :  { %v2151_v60 = vadd.f32 %v871_v40, %v2099_v33  ;;  %v2154_v21 = vadd.f32 %v872_v48, %v2102_v1  ;;  %v2157_v19 = vadd.f32 %v873_v46, %v2105_v3  ;;  %v2160_v7 = vadd.f32 %v874_v8, %v2108_v57 }
  0xdb   :  { %v2163_v10 = vadd.f32 %v875_v49, %v2111_v18  ;;  %v2166_v36 = vadd.f32 %v876_v14, %v2114_v63  ;;  %v2169_v47 = vadd.f32 %v877_v20, %v2117_v35  ;;  %v2172_v33 = vadd.f32 %v878_v44, %v2120_v38 }
  0xdc   :  { %v891_v1 = vstv %s2142_s13  ;;  %v900_v11 = vstv %s2144_s14  ;;  %v917_v12 = vstv %s2146_s17  ;;  %v934_v3 = vstv %s2148_s18 }
  0xdd   :  { %v892_v54 = vmul.f32 %v1878_v34, %v891_v1  ;;  %v893_v57 = vmul.f32 %v1881_v25, %v891_v1  ;;  %v894_v18 = vmul.f32 %v1884_v51, %v891_v1  ;;  %v895_v17 = vmul.f32 %v1887_v50, %v891_v1 }
  0xde   :  { %v896_v63 = vmul.f32 %v1890_v53, %v891_v1  ;;  %v897_v35 = vmul.f32 %v1893_v62, %v891_v1  ;;  %v898_v52 = vmul.f32 %v1896_v30, %v891_v1  ;;  %v899_v38 = vmul.f32 %v1899_v0, %v891_v1 }
  0xdf   :  { %v901_v61 = vmul.f32 %v1902_v2, %v900_v11  ;;  %v902_v23 = vmul.f32 %v1905_v4, %v900_v11  ;;  %v903_v39 = vmul.f32 %v1908_v6, %v900_v11  ;;  %v904_v32 = vmul.f32 %v1911_v31, %v900_v11 }
  0xe0   :  { %v905_v24 = vmul.f32 %v1914_v9, %v900_v11  ;;  %v906_v28 = vmul.f32 %v1917_v26, %v900_v11  ;;  %v907_v16 = vmul.f32 %v1920_v13, %v900_v11  ;;  %v908_v15 = vmul.f32 %v1923_v58, %v900_v11 }
  0xe1   :  { %v909_v45 = vadd.f32 %v901_v61, %v892_v54  ;;  %v910_v59 = vadd.f32 %v902_v23, %v893_v57  ;;  %v911_v43 = vadd.f32 %v903_v39, %v894_v18  ;;  %v912_v55 = vadd.f32 %v904_v32, %v895_v17 }
  0xe2   :  { %v913_v27 = vadd.f32 %v905_v24, %v896_v63  ;;  %v914_v5 = vadd.f32 %v906_v28, %v897_v35  ;;  %v915_v29 = vadd.f32 %v907_v16, %v898_v52  ;;  %v916_v22 = vadd.f32 %v908_v15, %v899_v38 }
  0xe3   :  { %v918_v41 = vadd.f32 %v917_v12, %v909_v45  ;;  %v919_v37 = vadd.f32 %v917_v12, %v910_v59  ;;  %v920_v42 = vadd.f32 %v917_v12, %v911_v43  ;;  %v921_v56 = vadd.f32 %v917_v12, %v912_v55 }
  0xe4   :  { %v922_v40 = vadd.f32 %v917_v12, %v913_v27  ;;  %v923_v48 = vadd.f32 %v917_v12, %v914_v5  ;;  %v924_v46 = vadd.f32 %v917_v12, %v915_v29  ;;  %v925_v8 = vadd.f32 %v917_v12, %v916_v22 }
  0xe5   :  { %v926_v49 = vmax.f32 %v918_v41, 0.0  ;;  %v927_v14 = vmax.f32 %v919_v37, 0.0  ;;  %v928_v20 = vmax.f32 %v920_v42, 0.0  ;;  %v929_v44 = vmax.f32 %v921_v56, 0.0 }
  0xe6   :  { %v930_v1 = vmax.f32 %v922_v40, 0.0  ;;  %v931_v11 = vmax.f32 %v923_v48, 0.0  ;;  %v932_v54 = vmax.f32 %v924_v46, 0.0  ;;  %v933_v57 = vmax.f32 %v925_v8, 0.0 }
  0xe7   :  { %v935_v18 = vmul.f32 %v934_v3, %v926_v49  ;;  %v936_v17 = vmul.f32 %v934_v3, %v927_v14  ;;  %v937_v63 = vmul.f32 %v934_v3, %v928_v20  ;;  %v938_v35 = vmul.f32 %v934_v3, %v929_v44 }
  0xe8   :  { %v939_v52 = vmul.f32 %v934_v3, %v930_v1  ;;  %v940_v38 = vmul.f32 %v934_v3, %v931_v11  ;;  %v941_v61 = vmul.f32 %v934_v3, %v932_v54  ;;  %v942_v12 = vmul.f32 %v934_v3, %v933_v57 }
  0xe9   :  { %v2203_v23 = vadd.f32 %v935_v18, %v2151_v60  ;;  %v2206_v39 = vadd.f32 %v936_v17, %v2154_v21  ;;  %v2209_v32 = vadd.f32 %v937_v63, %v2157_v19  ;;  %v2212_v24 = vadd.f32 %v938_v35, %v2160_v7 }
  0xea   :  { %v2215_v28 = vadd.f32 %v939_v52, %v2163_v10  ;;  %v2218_v16 = vadd.f32 %v940_v38, %v2166_v36  ;;  %v2221_v3 = vadd.f32 %v941_v61, %v2169_v47  ;;  %v2224_v60 = vadd.f32 %v942_v12, %v2172_v33 }
  0xeb   :  { %v955_v21 = vstv %s2194_s0  ;;  %v964_v15 = vstv %s2196_s19  ;;  %v981_v45 = vstv %s2198_s20  ;;  %v998_v19 = vstv %s2200_s21 }
  0xec   :  { %v956_v59 = vmul.f32 %v1878_v34, %v955_v21  ;;  %v957_v7 = vmul.f32 %v1881_v25, %v955_v21  ;;  %v958_v10 = vmul.f32 %v1884_v51, %v955_v21  ;;  %v959_v43 = vmul.f32 %v1887_v50, %v955_v21 }
  0xed   :  { %v960_v36 = vmul.f32 %v1890_v53, %v955_v21  ;;  %v961_v47 = vmul.f32 %v1893_v62, %v955_v21  ;;  %v962_v55 = vmul.f32 %v1896_v30, %v955_v21  ;;  %v963_v33 = vmul.f32 %v1899_v0, %v955_v21 }
  0xee   :  { %v965_v27 = vmul.f32 %v1902_v2, %v964_v15  ;;  %v966_v5 = vmul.f32 %v1905_v4, %v964_v15  ;;  %v967_v29 = vmul.f32 %v1908_v6, %v964_v15  ;;  %v968_v22 = vmul.f32 %v1911_v31, %v964_v15 }
  0xef   :  { %v969_v41 = vmul.f32 %v1914_v9, %v964_v15  ;;  %v970_v37 = vmul.f32 %v1917_v26, %v964_v15  ;;  %v971_v42 = vmul.f32 %v1920_v13, %v964_v15  ;;  %v972_v56 = vmul.f32 %v1923_v58, %v964_v15 }
  0xf0   :  { %v973_v40 = vadd.f32 %v965_v27, %v956_v59  ;;  %v974_v48 = vadd.f32 %v966_v5, %v957_v7  ;;  %v975_v46 = vadd.f32 %v967_v29, %v958_v10  ;;  %v976_v8 = vadd.f32 %v968_v22, %v959_v43 }
  0xf1   :  { %v977_v49 = vadd.f32 %v969_v41, %v960_v36  ;;  %v978_v14 = vadd.f32 %v970_v37, %v961_v47  ;;  %v979_v20 = vadd.f32 %v971_v42, %v962_v55  ;;  %v980_v44 = vadd.f32 %v972_v56, %v963_v33 }
  0xf2   :  { %v982_v1 = vadd.f32 %v981_v45, %v973_v40  ;;  %v983_v11 = vadd.f32 %v981_v45, %v974_v48  ;;  %v984_v54 = vadd.f32 %v981_v45, %v975_v46  ;;  %v985_v57 = vadd.f32 %v981_v45, %v976_v8 }
  0xf3   :  { %v986_v18 = vadd.f32 %v981_v45, %v977_v49  ;;  %v987_v17 = vadd.f32 %v981_v45, %v978_v14  ;;  %v988_v63 = vadd.f32 %v981_v45, %v979_v20  ;;  %v989_v35 = vadd.f32 %v981_v45, %v980_v44 }
  0xf4   :  { %v990_v52 = vmax.f32 %v982_v1, 0.0  ;;  %v991_v38 = vmax.f32 %v983_v11, 0.0  ;;  %v992_v61 = vmax.f32 %v984_v54, 0.0  ;;  %v993_v12 = vmax.f32 %v985_v57, 0.0 }
  0xf5   :  { %v994_v21 = vmax.f32 %v986_v18, 0.0  ;;  %v995_v15 = vmax.f32 %v987_v17, 0.0  ;;  %v996_v59 = vmax.f32 %v988_v63, 0.0  ;;  %v997_v7 = vmax.f32 %v989_v35, 0.0 }
  0xf6   :  { %v999_v10 = vmul.f32 %v998_v19, %v990_v52  ;;  %v1000_v43 = vmul.f32 %v998_v19, %v991_v38  ;;  %v1001_v36 = vmul.f32 %v998_v19, %v992_v61  ;;  %v1002_v47 = vmul.f32 %v998_v19, %v993_v12 }
  0xf7   :  { %v1003_v55 = vmul.f32 %v998_v19, %v994_v21  ;;  %v1004_v33 = vmul.f32 %v998_v19, %v995_v15  ;;  %v1005_v27 = vmul.f32 %v998_v19, %v996_v59  ;;  %v1006_v45 = vmul.f32 %v998_v19, %v997_v7 }
  0xf8   :  { %v1007_v5 = vadd.f32 %v999_v10, %v2203_v23  ;;  %v1008_v29 = vadd.f32 %v1000_v43, %v2206_v39  ;;  %v1009_v22 = vadd.f32 %v1001_v36, %v2209_v32  ;;  %v1010_v41 = vadd.f32 %v1002_v47, %v2212_v24 }
  0xf9   :  { %v1011_v37 = vadd.f32 %v1003_v55, %v2215_v28  ;;  %v1012_v42 = vadd.f32 %v1004_v33, %v2218_v16  ;;  %v1013_v56 = vadd.f32 %v1005_v27, %v2221_v3  ;;  %v1014_v40 = vadd.f32 %v1006_v45, %v2224_v60 }
  0xfa   :  { %v1019_v48 = vstv %s2246_s1  ;;  %v1028_v46 = vstv %s2248_s22  ;;  %v1045_v8 = vstv %s2250_s23  ;;  %v1062_v19 = vstv %s2252_s24 }
  0xfb   :  { %v1020_v23 = vmul.f32 %v1878_v34, %v1019_v48  ;;  %v1021_v39 = vmul.f32 %v1881_v25, %v1019_v48  ;;  %v1022_v32 = vmul.f32 %v1884_v51, %v1019_v48  ;;  %v1023_v24 = vmul.f32 %v1887_v50, %v1019_v48 }
  0xfc   :  { %v1024_v28 = vmul.f32 %v1890_v53, %v1019_v48  ;;  %v1025_v16 = vmul.f32 %v1893_v62, %v1019_v48  ;;  %v1026_v3 = vmul.f32 %v1896_v30, %v1019_v48  ;;  %v1027_v60 = vmul.f32 %v1899_v0, %v1019_v48 }
  0xfd   :  { %v1029_v49 = vmul.f32 %v1902_v2, %v1028_v46  ;;  %v1030_v14 = vmul.f32 %v1905_v4, %v1028_v46  ;;  %v1031_v34 = vmul.f32 %v1908_v6, %v1028_v46  ;;  %v1032_v25 = vmul.f32 %v1911_v31, %v1028_v46 }
  0xfe   :  { %v1033_v51 = vmul.f32 %v1914_v9, %v1028_v46  ;;  %v1034_v50 = vmul.f32 %v1917_v26, %v1028_v46  ;;  %v1035_v53 = vmul.f32 %v1920_v13, %v1028_v46  ;;  %v1036_v62 = vmul.f32 %v1923_v58, %v1028_v46 }
  0xff   :  { %v1037_v20 = vadd.f32 %v1029_v49, %v1020_v23  ;;  %v1038_v30 = vadd.f32 %v1030_v14, %v1021_v39  ;;  %v1039_v44 = vadd.f32 %v1031_v34, %v1022_v32  ;;  %v1040_v0 = vadd.f32 %v1032_v25, %v1023_v24 }
 0x100   :  { %v1041_v1 = vadd.f32 %v1033_v51, %v1024_v28  ;;  %v1042_v2 = vadd.f32 %v1034_v50, %v1025_v16  ;;  %v1043_v11 = vadd.f32 %v1035_v53, %v1026_v3  ;;  %v1044_v4 = vadd.f32 %v1036_v62, %v1027_v60 }
 0x101   :  { %v1046_v54 = vadd.f32 %v1045_v8, %v1037_v20  ;;  %v1047_v6 = vadd.f32 %v1045_v8, %v1038_v30  ;;  %v1048_v57 = vadd.f32 %v1045_v8, %v1039_v44  ;;  %v1049_v31 = vadd.f32 %v1045_v8, %v1040_v0 }
 0x102   :  { %v1050_v9 = vadd.f32 %v1045_v8, %v1041_v1  ;;  %v1051_v18 = vadd.f32 %v1045_v8, %v1042_v2  ;;  %v1052_v26 = vadd.f32 %v1045_v8, %v1043_v11  ;;  %v1053_v17 = vadd.f32 %v1045_v8, %v1044_v4 }
 0x103   :  { %v1054_v13 = vmax.f32 %v1046_v54, 0.0  ;;  %v1055_v63 = vmax.f32 %v1047_v6, 0.0  ;;  %v1056_v58 = vmax.f32 %v1048_v57, 0.0  ;;  %v1057_v35 = vmax.f32 %v1049_v31, 0.0 }
 0x104   :  { %v1058_v52 = vmax.f32 %v1050_v9, 0.0  ;;  %v1059_v38 = vmax.f32 %v1051_v18, 0.0  ;;  %v1060_v61 = vmax.f32 %v1052_v26, 0.0  ;;  %v1061_v12 = vmax.f32 %v1053_v17, 0.0 }
 0x105   :  { %v1063_v21 = vmul.f32 %v1062_v19, %v1054_v13  ;;  %v1064_v15 = vmul.f32 %v1062_v19, %v1055_v63  ;;  %v1065_v59 = vmul.f32 %v1062_v19, %v1056_v58  ;;  %v1066_v7 = vmul.f32 %v1062_v19, %v1057_v35 }
 0x106   :  { %v1067_v10 = vmul.f32 %v1062_v19, %v1058_v52  ;;  %v1068_v43 = vmul.f32 %v1062_v19, %v1059_v38  ;;  %v1069_v36 = vmul.f32 %v1062_v19, %v1060_v61  ;;  %v1070_v47 = vmul.f32 %v1062_v19, %v1061_v12 }
 0x107   :  { %v1071_v55 = vadd.f32 %v1063_v21, %v1007_v5  ;;  %v1072_v33 = vadd.f32 %v1064_v15, %v1008_v29  ;;  %v1073_v27 = vadd.f32 %v1065_v59, %v1009_v22  ;;  %v1074_v45 = vadd.f32 %v1066_v7, %v1010_v41 }
 0x108   :  { %v1075_v48 = vadd.f32 %v1067_v10, %v1011_v37  ;;  %v1076_v46 = vadd.f32 %v1068_v43, %v1012_v42  ;;  %v1077_v8 = vadd.f32 %v1069_v36, %v1013_v56  ;;  %v1078_v23 = vadd.f32 %v1070_v47, %v1014_v40 }
 0x109   :  { %v1080_v39 = vstv %s1299_s25 }
 0x10a   :  { %v2282_v32 = vadd.f32 %v1080_v39, %v1071_v55  ;;  %v2284_v24 = vadd.f32 %v1080_v39, %v1072_v33  ;;  %v2286_v28 = vadd.f32 %v1080_v39, %v1073_v27  ;;  %v2288_v16 = vadd.f32 %v1080_v39, %v1074_v45 }
 0x10b   :  { %v2290_v3 = vadd.f32 %v1080_v39, %v1075_v48  ;;  %v2292_v19 = vadd.f32 %v1080_v39, %v1076_v46  ;;  %v2294_v5 = vadd.f32 %v1080_v39, %v1077_v8  ;;  %v2296_v29 = vadd.f32 %v1080_v39, %v1078_v23 }
 0x10c   :  { %v1097_v22 = vand.u32 2147483647, %v2282_v32  ;;  %v1098_v41 = vand.u32 2147483647, %v2284_v24  ;;  %v1099_v37 = vand.u32 2147483647, %v2286_v28 }
 0x10d   :  { %v1100_v42 = vand.u32 2147483647, %v2288_v16  ;;  %v1101_v56 = vand.u32 2147483647, %v2290_v3  ;;  %v1102_v40 = vand.u32 2147483647, %v2292_v19 }
 0x10e   :  { %v1103_v60 = vand.u32 2147483647, %v2294_v5  ;;  %v1105_v49 = vsub.f32 0.0, %v1097_v22  ;;  %v1106_v14 = vsub.f32 0.0, %v1098_v41  ;;  %v1104_v34 = vand.u32 2147483647, %v2296_v29 }
 0x10f   :  { %v1107_v25 = vsub.f32 0.0, %v1099_v37  ;;  %v1108_v51 = vsub.f32 0.0, %v1100_v42  ;;  %v1109_v50 = vsub.f32 0.0, %v1101_v56  ;;  %v1110_v53 = vsub.f32 0.0, %v1102_v40 }
 0x110   :  { %v1113_v62 = vmul.f32 1.442695, %v1105_v49  ;;  %v1115_v20 = vmul.f32 1.442695, %v1106_v14  ;;  %v1111_v30 = vsub.f32 0.0, %v1103_v60  ;;  %v1112_v2 = vsub.f32 0.0, %v1104_v34 }
 0x111   :  { %v1117_v44 = vmul.f32 1.442695, %v1107_v25  ;;  %v1119_v0 = vmul.f32 1.442695, %v1108_v51  ;;  %v1121_v1 = vmul.f32 1.442695, %v1109_v50 }
 0x112   :  { %1305 = vpow2.f32 %v1113_v62  ;;  %v1123_v11 = vmul.f32 1.442695, %v1110_v53  ;;  %v1125_v4 = vmul.f32 1.442695, %v1111_v30  ;;  %v1127_v54 = vmul.f32 1.442695, %v1112_v2 }
 0x113   :  { %1307 = vpow2.f32 %v1115_v20  ;;  %v1089_v27 = vmax.f32 %v2282_v32, 0.0  ;;  %v1090_v8 = vmax.f32 %v2284_v24, 0.0  ;;  %v1091_v23 = vmax.f32 %v2286_v28, 0.0 }
 0x114   :  { %1309 = vpow2.f32 %v1117_v44  ;;  %v1092_v22 = vmax.f32 %v2288_v16, 0.0 }
 0x115   :  { %1311 = vpow2.f32 %v1119_v0 }
 0x116   :  { %1313 = vpow2.f32 %v1121_v1 }
 0x117   :  { %1315 = vpow2.f32 %v1123_v11 }
 0x118   :  { %1317 = vpow2.f32 %v1125_v4 }
 0x119   :  { %1319 = vpow2.f32 %v1127_v54 }
 0x11f   :  { %v1306_v6 = vpop.eup %1305 }
 0x120   :  { %v1308_v57 = vpop.eup %1307  ;;  %v1129_v31 = vadd.f32 1.0, %v1306_v6  ;;  %v1132_v52 = vmul.f32 -0.5, %v1306_v6  ;;  %v1135_v43 = vand.u32 2147483647, %v1306_v6 }
 0x121   :  { %v1310_v9 = vpop.eup %1309  ;;  %v1138_v18 = vadd.f32 1.0, %v1308_v57  ;;  %v1141_v61 = vmul.f32 -0.5, %v1308_v57  ;;  %v1144_v36 = vand.u32 2147483647, %v1308_v57 }
 0x122   :  { %v1312_v26 = vpop.eup %1311  ;;  %1321 = vlog2.f32 %v1129_v31  ;;  %v1147_v17 = vadd.f32 1.0, %v1310_v9  ;;  %v1150_v21 = vmul.f32 -0.5, %v1310_v9  ;;  %v1133_v10 = vadd.f32 1.0, %v1132_v52 }
 0x123   :  { %v2306_v13 = vpop.eup %1313  ;;  %1323 = vlog2.f32 %v1138_v18  ;;  %v1156_v63 = vadd.f32 1.0, %v1312_v26  ;;  %v1159_v59 = vmul.f32 -0.5, %v1312_v26  ;;  %v1142_v47 = vadd.f32 1.0, %v1141_v61 }
 0x124   :  { %1325 = vlog2.f32 %v1147_v17  ;;  %v2308_v58 = vpop.eup %1315  ;;  %v1165_v38 = vadd.f32 1.0, %v2306_v13  ;;  %v1168_v55 = vmul.f32 -0.5, %v2306_v13  ;;  %v1151_v45 = vadd.f32 1.0, %v1150_v21 }
 0x125   :  { %v2310_v35 = vpop.eup %1317  ;;  %1327 = vlog2.f32 %v1156_v63  ;;  %v1174_v15 = vadd.f32 1.0, %v2308_v58  ;;  %v1153_v48 = vand.u32 2147483647, %v1310_v9  ;;  %v1162_v46 = vand.u32 2147483647, %v1312_v26 }
 0x126   :  { %v2313_v12 = vpop.eup %1319  ;;  %1329 = vlog2.f32 %v1165_v38  ;;  %v1183_v7 = vadd.f32 1.0, %v2310_v35  ;;  %v1160_v39 = vadd.f32 1.0, %v1159_v59  ;;  %v1134_v41 = vmul.f32 %v1306_v6, %v1133_v10 }
 0x127   :  { %1331 = vlog2.f32 %v1174_v15  ;;  %v1192_v33 = vadd.f32 1.0, %v2313_v12  ;;  %vm2323_vm0 = vcmp.lt.f32.partialorder %v1135_v43, 0.0004427343  ;;  %v1177_v42 = vmul.f32 -0.5, %v2308_v58 }
 0x128   :  { %1333 = vlog2.f32 %v1183_v7  ;;  %v1143_v32 = vmul.f32 %v1308_v57, %v1142_v47  ;;  %vm2328_vm1 = vcmp.lt.f32.partialorder %v1144_v36, 0.0004427343  ;;  %v1169_v24 = vadd.f32 1.0, %v1168_v55 }
 0x129   :  { %1335 = vlog2.f32 %v1192_v33  ;;  %v1186_v28 = vmul.f32 -0.5, %v2310_v35  ;;  %v1152_v14 = vmul.f32 %v1310_v9, %v1151_v45  ;;  %vm2333_vm2 = vcmp.lt.f32.partialorder %v1153_v48, 0.0004427343 }
 0x12a   :  { %vm2337_vm3 = vcmp.lt.f32.partialorder %v1162_v46, 0.0004427343  ;;  %v1161_v50 = vmul.f32 %v1312_v26, %v1160_v39  ;;  %v1171_v53 = vand.u32 2147483647, %v2306_v13  ;;  %v1195_v62 = vmul.f32 -0.5, %v2313_v12 }
 0x12b   :  { %v1178_v44 = vadd.f32 1.0, %v1177_v42  ;;  %v1180_v0 = vand.u32 2147483647, %v2308_v58  ;;  %v1170_v11 = vmul.f32 %v2306_v13, %v1169_v24  ;;  %v1187_v4 = vadd.f32 1.0, %v1186_v28 }
 0x12c   :  { %v1189_v31 = vand.u32 2147483647, %v2310_v35  ;;  %v1093_v26 = vmax.f32 %v2290_v3, 0.0  ;;  %vm2353_vm4 = vcmp.lt.f32.partialorder %v1171_v53, 0.0004427343  ;;  %v1196_v63 = vadd.f32 1.0, %v1195_v62 }
 0x12d   :  { %v1179_v61 = vmul.f32 %v2308_v58, %v1178_v44  ;;  %v1198_v21 = vand.u32 2147483647, %v2313_v12  ;;  %v1094_v59 = vmax.f32 %v2292_v19, 0.0  ;;  %vm2362_vm5 = vcmp.lt.f32.partialorder %v1180_v0, 0.0004427343 }
 0x12e   :  { %v1188_v7 = vmul.f32 %v2310_v35, %v1187_v4  ;;  %v1095_v36 = vmax.f32 %v2294_v5, 0.0  ;;  %vm1190_vm6 = vcmp.lt.f32.partialorder %v1189_v31, 0.0004427343  ;;  %v1197_v33 = vmul.f32 %v2313_v12, %v1196_v63 }
 0x12f   :  { %v1322_v56 = vpop.eup %1321  ;;  %v1096_v45 = vmax.f32 %v2296_v29, 0.0  ;;  %vm1199_vm7 = vcmp.lt.f32.partialorder %v1198_v21, 0.0004427343 }
 0x130   :  { %v1324_v60 = vpop.eup %1323  ;;  %v1131_v49 = vmul.f32 0.6931472, %v1322_v56 }
 0x131   :  { %v1326_v25 = vpop.eup %1325  ;;  %v1140_v51 = vmul.f32 0.6931472, %v1324_v60 }
 0x132   :  { %v1137_v20 = vsel %vm2323_vm0, %v1134_v41, %v1131_v49  ;;  %v1149_v30 = vmul.f32 0.6931472, %v1326_v25  ;;  %v1328_v1 = vpop.eup %1327 }
 0x133   :  { %v1146_v2 = vsel %vm2328_vm1, %v1143_v32, %v1140_v51  ;;  %v1201_v54 = vadd.f32 %v1137_v20, %v1089_v27  ;;  %v1158_v57 = vmul.f32 0.6931472, %v1328_v1  ;;  %v1330_v18 = vpop.eup %1329 }
 0x134   :  { %v1155_v6 = vsel %vm2333_vm2, %v1152_v14, %v1149_v30  ;;  %v1202_v9 = vadd.f32 %v1146_v2, %v1090_v8  ;;  %v1167_v38 = vmul.f32 0.6931472, %v1330_v18  ;;  %v1332_v15 = vpop.eup %1331 }
 0x135   :  { %v1203_v52 = vadd.f32 %v1155_v6, %v1091_v23  ;;  %1209 = vst [vmem:[#allocation7] sm:$0xff] %v1201_v54  ;;  %v1164_v13 = vsel %vm2337_vm3, %v1161_v50, %v1158_v57  ;;  %v1334_v43 = vpop.eup %1333  ;;  %v1176_v47 = vmul.f32 0.6931472, %v1332_v15 }
 0x136   :  { %1210 = vst [vmem:[#allocation7 + $0x8] sm:$0xff] %v1202_v9  ;;  %v1204_v10 = vadd.f32 %v1164_v13, %v1092_v22  ;;  %v1173_v58 = vsel %vm2353_vm4, %v1170_v11, %v1167_v38  ;;  %v1185_v55 = vmul.f32 0.6931472, %v1334_v43  ;;  %v1336_v27 = vpop.eup %1335 }
 0x137   :  { %1211 = vst [vmem:[#allocation7 + $0x10] sm:$0xff] %v1203_v52  ;;  %v1205_v19 = vadd.f32 %v1173_v58, %v1093_v26  ;;  %v1182_v35 = vsel %vm2362_vm5, %v1179_v61, %v1176_v47  ;;  %v1194_v46 = vmul.f32 0.6931472, %v1336_v27 }
 0x138   :  { %1212 = vst [vmem:[#allocation7 + $0x18] sm:$0xff] %v1204_v10  ;;  %v1191_v48 = vsel %vm1190_vm6, %v1188_v7, %v1185_v55  ;;  %v1206_v5 = vadd.f32 %v1182_v35, %v1094_v59 }
 0x139   :  { %1213 = vst [vmem:[#allocation7 + $0x20] sm:$0xff] %v1205_v19  ;;  %v1207_v8 = vadd.f32 %v1191_v48, %v1095_v36  ;;  %v1200_v23 = vsel %vm1199_vm7, %v1197_v33, %v1194_v46 }
 0x13a   :  { %1214 = vst [vmem:[#allocation7 + $0x28] sm:$0xff] %v1206_v5  ;;  %v1208_v39 = vadd.f32 %v1200_v23, %v1096_v45 }
 0x13b   :  { %1215 = vst [vmem:[#allocation7 + $0x30] sm:$0xff] %v1207_v8 }
 0x13c   :  { %1216 = vst [vmem:[#allocation7 + $0x38] sm:$0xff] %v1208_v39 }
 0x13d   :  { %1392 = shalt.err (!%p1389_p9)
}
 0x13e   :  { %1228 = dma.vmem_to_hbm [thread:$0]  %s1223_s27, 1024, %s2382_s2, [#allocation4], %s1409_s15, %s1409_s15, %s1410_s16  }
 0x13f   :  { %1405 = dma.done.wait [#allocation4], 1024  }
 0x140   :  { %1406 = vsyncadd [#allocation4], 4294966272 }
 0x141   :  { %1232 = vsyncpa [#allocation3], 1 }
 0x142   :  { %1233 = vsyncpa [#allocation4], 1 }
 0x143   :  { %1234 = vsyncpa [#allocation5], 1 }

</bundles_post_ra>
